<compile_context>
chip_gen: v7x
topology: tpu7x:2x2x1
jax: 0.10.0
libtpu: 0.0.40
codegen_flags: <defaults>
</compile_context>

<pallas_src>
import functools

import jax
import jax.numpy as jnp
from jax.experimental import pallas as pl
from jax.experimental.pallas import tpu as pltpu


def _round_up(x, m):
    return ((x + m - 1) // m) * m


def _detect_vmem_bytes():
    try:
        return int(pltpu.get_tpu_info().vmem_capacity_bytes)
    except Exception:
        return 0


_PHYS_VMEM = _detect_vmem_bytes()
# v5e / v6e: 128 MiB per TensorCore; v7x: 64 MiB. Unknown -> conservative.
_BIG_VMEM = _PHYS_VMEM >= 96 * 1024 * 1024
_VMEM_LIMIT = (100 * 1024 * 1024) if _BIG_VMEM else (48 * 1024 * 1024)


# ----------------------------------------------------------------------------
# Pallas kernels
# ----------------------------------------------------------------------------
def _linear_kernel(x_ref, w_ref, b_ref, o_ref, acc_ref):
    """Tiled matmul with K-reduction accumulator. x/w arrive pre-cast to bf16."""
    @pl.when(pl.program_id(2) == 0)
    def _():
        acc_ref[...] = jnp.zeros_like(acc_ref)

    acc_ref[...] += jnp.dot(x_ref[...], w_ref[...],
                            preferred_element_type=jnp.float32)

    @pl.when(pl.program_id(2) == pl.num_programs(2) - 1)
    def _():
        o_ref[...] = (acc_ref[...] + b_ref[...]).astype(o_ref.dtype)


def _attn_block_kernel(q_ref, k_ref, v_ref, keep_ref, res_ref,
                       fcw_ref, fcb_ref, lnw_ref, lnb_ref, o_ref, ctx_ref,
                       *, scale, minf, causal, eps):
    """Fused multi-head attention + out-proj + residual + LayerNorm for one
    (batch, Lq-tile) grid point.

    q_ref: (H, bq, D); k_ref/v_ref: (H, Lk, D); keep_ref: (1, Lk);
    res_ref/o_ref: (bq, S); ctx_ref: (bq, S) f32 VMEM scratch.
    """
    H, bq, D = q_ref.shape
    Lk = k_ref.shape[1]

    q = q_ref[...]                                         # bf16
    k = k_ref[...]
    v = v_ref[...]

    # Mask: per-key keep vector (+ causal lower-triangle built in-kernel).
    keep = keep_ref[...] != 0.0                            # (1, Lk)
    if causal:
        q0 = pl.program_id(1) * bq
        qi = jax.lax.broadcasted_iota(jnp.int32, (bq, Lk), 0) + q0
        kj = jax.lax.broadcasted_iota(jnp.int32, (bq, Lk), 1)
        allowed = jnp.logical_and(keep, kj <= qi)          # (bq, Lk)
    else:
        allowed = keep                                     # (1, Lk)
    allowed = allowed[None]                                # broadcast over heads

    # TODO(synk): for long sequences (Lk >~ 1-2K) switch to flash-style
    # online-softmax tiling over Lk instead of full (H, bq, Lk) scores.
    # All-head scores with one batched matmul (batch dim = heads).
    s = jax.lax.dot_general(q, k, (((2,), (2,)), ((0,), (0,))),
                            preferred_element_type=jnp.float32)   # (H, bq, Lk)
    # PyTorch order: masked_fill(mask == 0, minf) then divide by sqrt(size).
    s = jnp.where(allowed, s, minf) * scale
    mx = jnp.max(s, axis=-1, keepdims=True)
    p = jnp.exp(s - mx)
    denom = jnp.sum(p, axis=-1, keepdims=True)
    attn = p * pl.reciprocal(denom, approx=False)          # exact rcp (EUP slot)
    ctx = jax.lax.dot_general(attn.astype(jnp.bfloat16), v,
                              (((2,), (1,)), ((0,), (0,))),
                              preferred_element_type=jnp.float32)  # (H, bq, D)

    # Pack heads into a (bq, S) buffer, then ONE full-S-contraction projection.
    for h in range(H):
        ctx_ref[:, h * D:(h + 1) * D] = ctx[h]
    proj = jnp.dot(ctx_ref[...].astype(jnp.bfloat16), fcw_ref[...],
                   preferred_element_type=jnp.float32)     # (bq, S)

    x = proj + fcb_ref[...] + res_ref[...].astype(jnp.float32)   # bias + residual
    mean = jnp.mean(x, axis=-1, keepdims=True)
    var = jnp.mean((x - mean) ** 2, axis=-1, keepdims=True)
    xn = (x - mean) * jax.lax.rsqrt(var + eps)
    o_ref[...] = (xn * lnw_ref[...] + lnb_ref[...]).astype(o_ref.dtype)


def _ffn_block_kernel(x_ref, w1_ref, b1_ref, w2_ref, b2_ref, lnw_ref, lnb_ref,
                      o_ref, acc_ref, *, eps):
    """Fused LayerNorm(x + Linear(ReLU(Linear(x)))); hidden dim H is a grid
    reduction axis with an f32 accumulator (bounds VMEM for large H)."""
    hi = pl.program_id(1)

    @pl.when(hi == 0)
    def _():
        acc_ref[...] = jnp.zeros_like(acc_ref)

    x = x_ref[...]                                         # bf16 (bm, S)
    h = jnp.dot(x, w1_ref[...], preferred_element_type=jnp.float32) + b1_ref[...]
    h = jnp.maximum(h, 0.0)                                # ReLU in f32
    acc_ref[...] += jnp.dot(h.astype(jnp.bfloat16), w2_ref[...],
                            preferred_element_type=jnp.float32)

    @pl.when(hi == pl.num_programs(1) - 1)
    def _():
        z = acc_ref[...] + b2_ref[...] + x.astype(jnp.float32)   # bias + residual
        mean = jnp.mean(z, axis=-1, keepdims=True)
        var = jnp.mean((z - mean) ** 2, axis=-1, keepdims=True)
        zn = (z - mean) * jax.lax.rsqrt(var + eps)
        o_ref[...] = (zn * lnw_ref[...] + lnb_ref[...]).astype(o_ref.dtype)


# ----------------------------------------------------------------------------
# Pallas wrappers
# ----------------------------------------------------------------------------
def linear(x, w, b=None, out_dtype=jnp.bfloat16):
    """x: [..., K] @ w: [K, N] (+ b). Tiled M/N/K grid; bf16 operands, f32 acc."""
    lead = x.shape[:-1]
    K = x.shape[-1]
    N = w.shape[-1]
    x2 = x.reshape(-1, K).astype(jnp.bfloat16)
    M = x2.shape[0]

    # Lane tiling of N: keep unpadded when already aligned (or tiny, < 128).
    if N % 128 == 0 or N < 128:
        Np = N
    else:
        Np = _round_up(N, 128)
    bn_cands = (1024, 512, 256, 128) if _BIG_VMEM else (512, 256, 128)
    bn = next((c for c in bn_cands if Np % c == 0), Np)

    # Row tiles: bigger on v5e/v6e (more VMEM), whole thing at small M.
    bm_max = 512 if _BIG_VMEM else 256
    bm = bm_max if M > bm_max else _round_up(M, 8)
    Mp = _round_up(M, bm)

    # K reduction: keep resident when it fits, tile in 512 chunks when large.
    k_resident = 4096 if _BIG_VMEM else 2048
    if K <= k_resident:
        Kp, bk = K, K
    else:
        Kp = _round_up(K, 512)
        bk = 512

    if Mp != M or Kp != K:
        x2 = jnp.pad(x2, ((0, Mp - M), (0, Kp - K)))
    wb = w.astype(jnp.bfloat16)
    if Kp != K or Np != N:
        wb = jnp.pad(wb, ((0, Kp - K), (0, Np - N)))
    bvec = b if b is not None else jnp.zeros((N,), jnp.float32)
    bp = (bvec if Np == N else jnp.pad(bvec, (0, Np - N)))
    bp = bp.reshape(1, Np).astype(jnp.float32)

    out = pl.pallas_call(
        _linear_kernel,
        out_shape=jax.ShapeDtypeStruct((Mp, Np), out_dtype),
        grid=(Mp // bm, Np // bn, Kp // bk),
        in_specs=[
            pl.BlockSpec((bm, bk), lambda i, j, k: (i, k)),
            pl.BlockSpec((bk, bn), lambda i, j, k: (k, j)),
            pl.BlockSpec((1, bn), lambda i, j, k: (0, j)),
        ],
        out_specs=pl.BlockSpec((bm, bn), lambda i, j, k: (i, j)),
        scratch_shapes=[pltpu.VMEM((bm, bn), jnp.float32)],
        compiler_params=pltpu.CompilerParams(
            dimension_semantics=("parallel", "parallel", "arbitrary"),
            vmem_limit_bytes=_VMEM_LIMIT,
        ),
    )(x2, wb, bp)
    if Mp != M or Np != N:
        out = out[:M, :N]
    return out.reshape(*lead, N)


def attention_block(q, k, v, keep, residual, fc_w, fc_b, ln_w, ln_b,
                    size, n_head, causal, minf=-1e20, eps=1e-5,
                    out_dtype=jnp.bfloat16):
    """LayerNorm(SelfAttention(q, k, v) @ fc + fc_b + residual).

    Grid: (batch, Lq-tiles), both parallel. q/k/v fed head-major (B, H, L, D).
    """
    B, Lq, S = q.shape
    Lk = k.shape[1]
    D = S // n_head
    scale = 1.0 / (size ** 0.5)   # PyTorch divides by sqrt(size), not sqrt(head_dim)

    # Head-major layouts (XLA-level transpose; avoids per-head lane slicing
    # inside the kernel, enables batched all-head matmuls).
    qh = jnp.transpose(q.reshape(B, Lq, n_head, D), (0, 2, 1, 3)).astype(jnp.bfloat16)
    kh = jnp.transpose(k.reshape(B, Lk, n_head, D), (0, 2, 1, 3)).astype(jnp.bfloat16)
    vh = jnp.transpose(v.reshape(B, Lk, n_head, D), (0, 2, 1, 3)).astype(jnp.bfloat16)
    res = residual.astype(jnp.bfloat16)
    keep3 = keep.reshape(B, 1, Lk).astype(jnp.float32)
    fcw = fc_w.astype(jnp.bfloat16)

    # Lq tiling (parallel grid axis; also keeps (H, bq, Lk) scores bounded).
    if Lq <= 128:
        Lqp = _round_up(Lq, 8)
        bq = Lqp
    else:
        bq = 128
        Lqp = _round_up(Lq, bq)
    if Lqp != Lq:
        pad = Lqp - Lq
        qh = jnp.pad(qh, ((0, 0), (0, 0), (0, pad), (0, 0)))
        res = jnp.pad(res, ((0, 0), (0, pad), (0, 0)))

    kern = functools.partial(_attn_block_kernel, scale=scale, minf=minf,
                             causal=causal, eps=eps)
    out = pl.pallas_call(
        kern,
        out_shape=jax.ShapeDtypeStruct((B, Lqp, S), out_dtype),
        grid=(B, Lqp // bq),
        in_specs=[
            pl.BlockSpec((None, n_head, bq, D), lambda b, i: (b, 0, i, 0)),  # q
            pl.BlockSpec((None, n_head, Lk, D), lambda b, i: (b, 0, 0, 0)),  # k
            pl.BlockSpec((None, n_head, Lk, D), lambda b, i: (b, 0, 0, 0)),  # v
            pl.BlockSpec((None, 1, Lk), lambda b, i: (b, 0, 0)),             # keep
            pl.BlockSpec((None, bq, S), lambda b, i: (b, i, 0)),             # residual
            pl.BlockSpec((S, S), lambda b, i: (0, 0)),                       # fc_w
            pl.BlockSpec((1, S), lambda b, i: (0, 0)),                       # fc_b
            pl.BlockSpec((1, S), lambda b, i: (0, 0)),                       # ln_w
            pl.BlockSpec((1, S), lambda b, i: (0, 0)),                       # ln_b
        ],
        out_specs=pl.BlockSpec((None, bq, S), lambda b, i: (b, i, 0)),
        scratch_shapes=[pltpu.VMEM((bq, S), jnp.float32)],
        compiler_params=pltpu.CompilerParams(
            dimension_semantics=("parallel", "parallel"),
            vmem_limit_bytes=_VMEM_LIMIT,
        ),
    )(qh, kh, vh, keep3, res, fcw,
      fc_b.reshape(1, S).astype(jnp.float32),
      ln_w.reshape(1, S).astype(jnp.float32),
      ln_b.reshape(1, S).astype(jnp.float32))
    if Lqp != Lq:
        out = out[:, :Lq]
    return out


def ffn_block(x, w1, b1, w2, b2, ln_w, ln_b, eps=1e-5, out_dtype=jnp.bfloat16):
    """LayerNorm(x + Linear(ReLU(Linear(x)))). Grid: (row tiles, H tiles)."""
    lead = x.shape[:-1]
    S = x.shape[-1]
    H = w1.shape[-1]
    x2 = x.reshape(-1, S).astype(jnp.bfloat16)
    M = x2.shape[0]

    bm_max = 512 if _BIG_VMEM else 256
    bm = bm_max if M > bm_max else _round_up(M, 8)
    Mp = _round_up(M, bm)
    if Mp != M:
        x2 = jnp.pad(x2, ((0, Mp - M), (0, 0)))

    h_resident = 4096 if _BIG_VMEM else 1024
    if H <= h_resident:
        bh = H
    elif H % 512 == 0:
        bh = 512
    else:
        bh = H

    kern = functools.partial(_ffn_block_kernel, eps=eps)
    out = pl.pallas_call(
        kern,
        out_shape=jax.ShapeDtypeStruct((Mp, S), out_dtype),
        grid=(Mp // bm, H // bh),
        in_specs=[
            pl.BlockSpec((bm, S), lambda i, h: (i, 0)),     # x
            pl.BlockSpec((S, bh), lambda i, h: (0, h)),     # w1
            pl.BlockSpec((1, bh), lambda i, h: (0, h)),     # b1
            pl.BlockSpec((bh, S), lambda i, h: (h, 0)),     # w2
            pl.BlockSpec((1, S), lambda i, h: (0, 0)),      # b2
            pl.BlockSpec((1, S), lambda i, h: (0, 0)),      # ln_w
            pl.BlockSpec((1, S), lambda i, h: (0, 0)),      # ln_b
        ],
        out_specs=pl.BlockSpec((bm, S), lambda i, h: (i, 0)),
        scratch_shapes=[pltpu.VMEM((bm, S), jnp.float32)],
        compiler_params=pltpu.CompilerParams(
            dimension_semantics=("parallel", "arbitrary"),
            vmem_limit_bytes=_VMEM_LIMIT,
        ),
    )(x2, w1.astype(jnp.bfloat16), b1.reshape(1, H).astype(jnp.float32),
      w2.astype(jnp.bfloat16), b2.reshape(1, S).astype(jnp.float32),
      ln_w.reshape(1, S).astype(jnp.float32), ln_b.reshape(1, S).astype(jnp.float32))
    if Mp != M:
        out = out[:M]
    return out.reshape(*lead, S)


# ----------------------------------------------------------------------------
# Model forward (glue in JAX; compute in the fused Pallas kernels above)
# ----------------------------------------------------------------------------
def self_attention_block_fwd(attn_p, vals, keys, qs, keep, causal,
                             ln_w, ln_b, size, n_head):
    """LayerNorm(SelfAttention(vals, keys, qs, mask) + qs)."""
    vkq_w = attn_p["vkq_w"]                  # [Wv | Wk | Wq], (S, 3S)
    if vals is keys and keys is qs:
        vkq = linear(qs, vkq_w)              # fused QKV projection (one matmul)
        v = vkq[..., :size]
        k = vkq[..., size:2 * size]
        q = vkq[..., 2 * size:]
    elif vals is keys:
        vk = linear(vals, vkq_w[:, :2 * size])   # fused KV (cross-attention)
        v = vk[..., :size]
        k = vk[..., size:]
        q = linear(qs, vkq_w[:, 2 * size:])
    else:
        v = linear(vals, vkq_w[:, :size])
        k = linear(keys, vkq_w[:, size:2 * size])
        q = linear(qs, vkq_w[:, 2 * size:])
    return attention_block(q, k, v, keep, qs, attn_p["fc_w"], attn_p["fc_b"],
                           ln_w, ln_b, size, n_head, causal)


def transformer_block_fwd(p, vals, keys, qs, keep, size, n_head):
    # x = norm(attn + qs); x = norm(x + fc(x))  -- same norm params as PyTorch ref
    x = self_attention_block_fwd(p["attn"], vals, keys, qs, keep, False,
                                 p["ln_w"], p["ln_b"], size, n_head)
    # dropout(p=0) -> identity
    return ffn_block(x, p["fc1_w"], p["fc1_b"], p["fc2_w"], p["fc2_b"],
                     p["ln_w"], p["ln_b"])


def decoder_block_fwd(p, x, enc, keep_src, keep_all, size, n_head):
    # causal masked self-attention + residual + DecoderBlock's own norm
    y = self_attention_block_fwd(p["attn"], x, x, x, keep_all, True,
                                 p["ln_w"], p["ln_b"], size, n_head)
    # cross-attention transformer block (source-padding mask on keys)
    return transformer_block_fwd(p["transform"], enc, enc, y, keep_src, size, n_head)


def encoder_fwd(p, tokens, keep_src, size, n_head):
    B, L = tokens.shape
    h = p["word_e"][tokens] + p["pos_e"][jnp.arange(L)][None, :, :]
    for lp in p["layers"]:
        h = transformer_block_fwd(lp, h, h, h, keep_src, size, n_head)
    return h


def decoder_fwd(p, tokens, enc, keep_src, size, n_head):
    B, L = tokens.shape
    h = p["word_e"][tokens] + p["pos_e"][jnp.arange(L)][None, :, :]
    keep_all = jnp.ones((B, L), jnp.float32)
    for lp in p["layers"]:
        h = decoder_block_fwd(lp, h, enc, keep_src, keep_all, size, n_head)
    return linear(h, p["fc_w"], p["fc_b"], out_dtype=jnp.float32)   # logits in f32


def transformer_fwd(params, x, x_, cfg):
    size, n_head, pad = cfg["size"], cfg["n_head"], cfg["pad"]
    # Mask is carried as a per-key keep-vector; causal part is built in-kernel.
    keep_src = (x != pad).astype(jnp.float32)               # (B, Ls)
    enc = encoder_fwd(params["encoder"], x, keep_src, size, n_head)
    return decoder_fwd(params["decoder"], x_, enc, keep_src, size, n_head)


# ----------------------------------------------------------------------------
# Deterministic parameter init (synthetic; shapes follow the PyTorch __init__)
# ----------------------------------------------------------------------------
def init_params(key, cfg):
    size, exp = cfg["size"], cfg["exp"]
    keys = iter(jax.random.split(key, 4096))

    def nrm(shape, scale=0.05):
        return (scale * jax.random.normal(next(keys), shape)).astype(jnp.float32)

    def attn_params():
        vkq_w = jnp.concatenate(
            [nrm((size, size)), nrm((size, size)), nrm((size, size))], axis=1)
        return dict(vkq_w=vkq_w, fc_w=nrm((size, size)), fc_b=nrm((size,)))

    def tb_params():
        return dict(
            attn=attn_params(),
            fc1_w=nrm((size, size * exp)), fc1_b=nrm((size * exp,)),
            fc2_w=nrm((size * exp, size)), fc2_b=nrm((size,)),
            ln_w=jnp.ones((size,), jnp.float32), ln_b=jnp.zeros((size,), jnp.float32),
        )

    def db_params():
        return dict(
            attn=attn_params(),
            ln_w=jnp.ones((size,), jnp.float32), ln_b=jnp.zeros((size,), jnp.float32),
            transform=tb_params(),
        )

    encoder = dict(
        word_e=nrm((cfg["vocab_size"], size), 1.0),
        pos_e=nrm((cfg["pos_size"], size), 1.0),
        layers=[tb_params() for _ in range(cfg["n_layer"])],
    )
    decoder = dict(
        word_e=nrm((cfg["vocab_size_"], size), 1.0),
        pos_e=nrm((cfg["pos_size"], size), 1.0),
        layers=[db_params() for _ in range(cfg["n_layer"])],
        fc_w=nrm((size, cfg["vocab_size_"])),
        fc_b=nrm((cfg["vocab_size_"],)),
    )
    return dict(encoder=encoder, decoder=decoder)


if __name__ == "__main__":
    cfg = dict(
        vocab_size=11, vocab_size_=13, pos_size=16,
        size=32, n_head=4, n_layer=2, exp=2, pad=0,
    )
    key = jax.random.PRNGKey(0)
    pk, xk, yk = jax.random.split(key, 3)
    params = init_params(pk, cfg)

    B, Ls, Lt = 2, 8, 8
    x = jax.random.randint(xk, (B, Ls), 0, cfg["vocab_size"], dtype=jnp.int32)
    x_ = jax.random.randint(yk, (B, Lt), 0, cfg["vocab_size_"], dtype=jnp.int32)

    fwd = jax.jit(functools.partial(transformer_fwd, cfg=cfg))
    out = jax.block_until_ready(fwd(params, x, x_))
    assert out.shape == (B, Lt, cfg["vocab_size_"]), out.shape
    assert jnp.all(jnp.isfinite(out))
    print("KERNEL_OK")
</pallas_src>

<mosaic_0001>
module attributes {stable_mosaic.version = 11 : i64} {
  func.func @_linear_kernel(%arg0: i32, %arg1: i32, %arg2: i32, %arg3: memref<16x32xbf16, #tpu.memory_space<vmem>>, %arg4: memref<32x96xbf16, #tpu.memory_space<vmem>>, %arg5: memref<1x96xf32, #tpu.memory_space<vmem>>, %arg6: memref<16x96xbf16, #tpu.memory_space<vmem>>, %arg7: memref<16x96xf32, #tpu.memory_space<vmem>>) attributes {dimension_semantics = [#tpu.dimension_semantics<parallel>, #tpu.dimension_semantics<parallel>, #tpu.dimension_semantics<arbitrary>], iteration_bounds = array<i64: 1, 1, 1>, scalar_prefetch = 0 : i64, scratch_operands = 1 : i64, tpu.core_type = #tpu.core_type<tc>, window_params = [{transform_indices = @transform_0, window_bounds = array<i64: 16, 32>}, {transform_indices = @transform_1, window_bounds = array<i64: 32, 96>}, {transform_indices = @transform_2, window_bounds = array<i64: 1, 96>}, {transform_indices = @transform_3, window_bounds = array<i64: 16, 96>}]} {
    %c0_i32 = arith.constant 0 : i32
    %0 = arith.cmpi eq, %arg2, %c0_i32 : i32
    %1 = arith.extui %0 : i1 to i32
    %c0_i32_0 = arith.constant 0 : i32
    %2 = arith.cmpi ne, %1, %c0_i32_0 : i32
    scf.if %2 {
      %cst_10 = arith.constant 0.000000e+00 : f32
      %12 = vector.broadcast %cst_10 : f32 to vector<16x96xf32>
      %c0_11 = arith.constant 0 : index
      %c0_12 = arith.constant 0 : index
      %13 = vector.load %arg7[%c0_11, %c0_12] : memref<16x96xf32, #tpu.memory_space<vmem>>, vector<16x96xf32>
      tpu.vector_store %arg7[%c0_11, %c0_12], %12 {strides = array<i32>} : memref<16x96xf32, #tpu.memory_space<vmem>>, vector<16x96xf32>,
    } else {
    }
    %c0 = arith.constant 0 : index
    %c0_1 = arith.constant 0 : index
    %3 = vector.load %arg7[%c0, %c0_1] : memref<16x96xf32, #tpu.memory_space<vmem>>, vector<16x96xf32>
    %c0_2 = arith.constant 0 : index
    %c0_3 = arith.constant 0 : index
    %4 = vector.load %arg3[%c0_2, %c0_3] : memref<16x32xbf16, #tpu.memory_space<vmem>>, vector<16x32xbf16>
    %c0_4 = arith.constant 0 : index
    %c0_5 = arith.constant 0 : index
    %5 = vector.load %arg4[%c0_4, %c0_5] : memref<32x96xbf16, #tpu.memory_space<vmem>>, vector<32x96xbf16>
    %cst = arith.constant dense<0.000000e+00> : vector<16x96xf32>
    %6 = tpu.matmul %4, %5, %cst {dimension_numbers = #tpu.dot_dimension_numbers<[1], [0], [0], [1], [0, 0, 1, 1], [], []>} : vector<16x32xbf16>, vector<32x96xbf16>, vector<16x96xf32> -> vector<16x96xf32>
    %7 = arith.addf %3, %6 : vector<16x96xf32>
    %c0_6 = arith.constant 0 : index
    %c0_7 = arith.constant 0 : index
    %8 = vector.load %arg7[%c0_6, %c0_7] : memref<16x96xf32, #tpu.memory_space<vmem>>, vector<16x96xf32>
    tpu.vector_store %arg7[%c0_6, %c0_7], %7 {strides = array<i32>} : memref<16x96xf32, #tpu.memory_space<vmem>>, vector<16x96xf32>,
    %c0_i32_8 = arith.constant 0 : i32
    %9 = arith.cmpi eq, %arg2, %c0_i32_8 : i32
    %10 = arith.extui %9 : i1 to i32
    %c0_i32_9 = arith.constant 0 : i32
    %11 = arith.cmpi ne, %10, %c0_i32_9 : i32
    scf.if %11 {
      %c0_10 = arith.constant 0 : index
      %c0_11 = arith.constant 0 : index
      %12 = vector.load %arg7[%c0_10, %c0_11] : memref<16x96xf32, #tpu.memory_space<vmem>>, vector<16x96xf32>
      %c0_12 = arith.constant 0 : index
      %c0_13 = arith.constant 0 : index
      %13 = vector.load %arg5[%c0_12, %c0_13] : memref<1x96xf32, #tpu.memory_space<vmem>>, vector<1x96xf32>
      %14 = vector.broadcast %13 : vector<1x96xf32> to vector<16x96xf32>
      %15 = arith.addf %12, %14 : vector<16x96xf32>
      %16 = arith.truncf %15 : vector<16x96xf32> to vector<16x96xbf16>
      %c0_14 = arith.constant 0 : index
      %c0_15 = arith.constant 0 : index
      %17 = vector.load %arg6[%c0_14, %c0_15] : memref<16x96xbf16, #tpu.memory_space<vmem>>, vector<16x96xbf16>
      tpu.vector_store %arg6[%c0_14, %c0_15], %16 {strides = array<i32>} : memref<16x96xbf16, #tpu.memory_space<vmem>>, vector<16x96xbf16>,
    } else {
    }
    return
  }
  func.func @transform_0(%arg0: i32, %arg1: i32, %arg2: i32) -> (i32, i32) {
    %c0_i32 = arith.constant 0 : i32
    return %arg0, %arg2 : i32, i32
  }
  func.func @transform_1(%arg0: i32, %arg1: i32, %arg2: i32) -> (i32, i32) {
    %c0_i32 = arith.constant 0 : i32
    return %arg2, %arg1 : i32, i32
  }
  func.func @transform_2(%arg0: i32, %arg1: i32, %arg2: i32) -> (i32, i32) {
    %c0_i32 = arith.constant 0 : i32
    %c0_i32_0 = arith.constant 0 : i32
    return %c0_i32, %arg1 : i32, i32
  }
  func.func @transform_3(%arg0: i32, %arg1: i32, %arg2: i32) -> (i32, i32) {
    %c0_i32 = arith.constant 0 : i32
    return %arg0, %arg1 : i32, i32
  }
}

module attributes {stable_mosaic.version = 11 : i64} {
  func.func @_attn_block_kernel(%arg0: i32, %arg1: i32, %arg2: memref<1x4x8x8xbf16, #tpu.memory_space<vmem>>, %arg3: memref<1x4x8x8xbf16, #tpu.memory_space<vmem>>, %arg4: memref<1x4x8x8xbf16, #tpu.memory_space<vmem>>, %arg5: memref<1x1x8xf32, #tpu.memory_space<vmem>>, %arg6: memref<1x8x32xbf16, #tpu.memory_space<vmem>>, %arg7: memref<32x32xbf16, #tpu.memory_space<vmem>>, %arg8: memref<1x32xf32, #tpu.memory_space<vmem>>, %arg9: memref<1x32xf32, #tpu.memory_space<vmem>>, %arg10: memref<1x32xf32, #tpu.memory_space<vmem>>, %arg11: memref<1x8x32xbf16, #tpu.memory_space<vmem>>, %arg12: memref<8x32xf32, #tpu.memory_space<vmem>>) attributes {dimension_semantics = [#tpu.dimension_semantics<parallel>, #tpu.dimension_semantics<parallel>], iteration_bounds = array<i64: 2, 1>, scalar_prefetch = 0 : i64, scratch_operands = 1 : i64, tpu.core_type = #tpu.core_type<tc>, window_params = [{transform_indices = @transform_0, window_bounds = array<i64: 1, 4, 8, 8>}, {transform_indices = @transform_1, window_bounds = array<i64: 1, 4, 8, 8>}, {transform_indices = @transform_2, window_bounds = array<i64: 1, 4, 8, 8>}, {transform_indices = @transform_3, window_bounds = array<i64: 1, 1, 8>}, {transform_indices = @transform_4, window_bounds = array<i64: 1, 8, 32>}, {pipeline_mode = #tpu.pipeline_mode<synchronous>, transform_indices = @transform_5, window_bounds = array<i64: 32, 32>}, {pipeline_mode = #tpu.pipeline_mode<synchronous>, transform_indices = @transform_6, window_bounds = array<i64: 1, 32>}, {pipeline_mode = #tpu.pipeline_mode<synchronous>, transform_indices = @transform_7, window_bounds = array<i64: 1, 32>}, {pipeline_mode = #tpu.pipeline_mode<synchronous>, transform_indices = @transform_8, window_bounds = array<i64: 1, 32>}, {transform_indices = @transform_9, window_bounds = array<i64: 1, 8, 32>}]} {
    %c0 = arith.constant 0 : index
    %c0_0 = arith.constant 0 : index
    %c0_1 = arith.constant 0 : index
    %c0_2 = arith.constant 0 : index
    %0 = vector.load %arg2[%c0, %c0_0, %c0_1, %c0_2] : memref<1x4x8x8xbf16, #tpu.memory_space<vmem>>, vector<1x4x8x8xbf16>
    %1 = vector.shape_cast %0 : vector<1x4x8x8xbf16> to vector<4x8x8xbf16>
    %c0_3 = arith.constant 0 : index
    %c0_4 = arith.constant 0 : index
    %c0_5 = arith.constant 0 : index
    %c0_6 = arith.constant 0 : index
    %2 = vector.load %arg3[%c0_3, %c0_4, %c0_5, %c0_6] : memref<1x4x8x8xbf16, #tpu.memory_space<vmem>>, vector<1x4x8x8xbf16>
    %3 = vector.shape_cast %2 : vector<1x4x8x8xbf16> to vector<4x8x8xbf16>
    %c0_7 = arith.constant 0 : index
    %c0_8 = arith.constant 0 : index
    %c0_9 = arith.constant 0 : index
    %c0_10 = arith.constant 0 : index
    %4 = vector.load %arg4[%c0_7, %c0_8, %c0_9, %c0_10] : memref<1x4x8x8xbf16, #tpu.memory_space<vmem>>, vector<1x4x8x8xbf16>
    %5 = vector.shape_cast %4 : vector<1x4x8x8xbf16> to vector<4x8x8xbf16>
    %c0_11 = arith.constant 0 : index
    %c0_12 = arith.constant 0 : index
    %c0_13 = arith.constant 0 : index
    %6 = vector.load %arg5[%c0_11, %c0_12, %c0_13] : memref<1x1x8xf32, #tpu.memory_space<vmem>>, vector<1x1x8xf32>
    %7 = vector.shape_cast %6 : vector<1x1x8xf32> to vector<1x8xf32>
    %cst = arith.constant 0.000000e+00 : f32
    %8 = vector.broadcast %cst : f32 to vector<1x8xf32>
    %9 = arith.cmpf one, %7, %8 : vector<1x8xf32>
    %c8_i32 = arith.constant 8 : i32
    %10 = arith.muli %arg1, %c8_i32 : i32
    %11 = tpu.iota {dimensions = array<i32: 0>} : vector<8x8xi32>
    %12 = vector.broadcast %10 : i32 to vector<8x8xi32>
    %13 = arith.addi %11, %12 : vector<8x8xi32>
    %14 = tpu.iota {dimensions = array<i32: 1>} : vector<8x8xi32>
    %15 = arith.cmpi sle, %14, %13 : vector<8x8xi32>
    %16 = vector.broadcast %9 : vector<1x8xi1> to vector<8x8xi1>
    %17 = arith.andi %16, %15 : vector<8x8xi1>
    %18 = vector.shape_cast %17 : vector<8x8xi1> to vector<1x8x8xi1>
    %cst_14 = arith.constant dense<0.000000e+00> : vector<4x8x8xf32>
    %19 = tpu.matmul %1, %3, %cst_14 {dimension_numbers = #tpu.dot_dimension_numbers<[2], [2], [1], [1], [0, 0, 0, 1, 1, 1], [0], [0]>} : vector<4x8x8xbf16>, vector<4x8x8xbf16>, vector<4x8x8xf32> -> vector<4x8x8xf32>
    %cst_15 = arith.constant -1.000000e+20 : f32
    %20 = vector.shape_cast %18 : vector<1x8x8xi1> to vector<1x8x8xi1>
    %21 = vector.broadcast %20 : vector<1x8x8xi1> to vector<4x8x8xi1>
    %22 = vector.broadcast %cst_15 : f32 to vector<4x8x8xf32>
    %23 = arith.select %21, %19, %22 : vector<4x8x8xi1>, vector<4x8x8xf32>
    %cst_16 = arith.constant 0.176776692 : f32
    %24 = vector.broadcast %cst_16 : f32 to vector<4x8x8xf32>
    %25 = arith.mulf %23, %24 : vector<4x8x8xf32>
    %cst_17 = arith.constant dense<0xFF800000> : vector<4x8xf32>
    %26 = vector.multi_reduction <maximumf>, %25, %cst_17 [2] : vector<4x8x8xf32> to vector<4x8xf32>
    %27 = vector.shape_cast %26 : vector<4x8xf32> to vector<4x8x1xf32>
    %28 = vector.broadcast %27 : vector<4x8x1xf32> to vector<4x8x8xf32>
    %29 = arith.subf %25, %28 : vector<4x8x8xf32>
    %30 = math.exp %29 : vector<4x8x8xf32>
    %cst_18 = arith.constant dense<0.000000e+00> : vector<4x8xf32>
    %31 = vector.multi_reduction <add>, %30, %cst_18 [2] : vector<4x8x8xf32> to vector<4x8xf32>
    %32 = vector.shape_cast %31 : vector<4x8xf32> to vector<4x8x1xf32>
    %33 = tpu.reciprocal %32 : vector<4x8x1xf32> -> vector<4x8x1xf32>
    %34 = vector.broadcast %33 : vector<4x8x1xf32> to vector<4x8x8xf32>
    %35 = arith.mulf %30, %34 : vector<4x8x8xf32>
    %36 = arith.truncf %35 : vector<4x8x8xf32> to vector<4x8x8xbf16>
    %cst_19 = arith.constant dense<0.000000e+00> : vector<4x8x8xf32>
    %37 = tpu.matmul %36, %5, %cst_19 {dimension_numbers = #tpu.dot_dimension_numbers<[2], [1], [1], [2], [0, 0, 0, 1, 1, 2], [0], [0]>} : vector<4x8x8xbf16>, vector<4x8x8xbf16>, vector<4x8x8xf32> -> vector<4x8x8xf32>
    %38 = vector.extract_strided_slice %37 {offsets = [0, 0, 0], sizes = [1, 8, 8], strides = [1, 1, 1]} : vector<4x8x8xf32> to vector<1x8x8xf32>
    %39 = vector.shape_cast %38 : vector<1x8x8xf32> to vector<8x8xf32>
    %c0_20 = arith.constant 0 : index
    %c0_21 = arith.constant 0 : index
    %40 = vector.load %arg12[%c0_20, %c0_21] : memref<8x32xf32, #tpu.memory_space<vmem>>, vector<8x8xf32>
    tpu.vector_store %arg12[%c0_20, %c0_21], %39 {strides = array<i32>} : memref<8x32xf32, #tpu.memory_space<vmem>>, vector<8x8xf32>,
    %41 = vector.extract_strided_slice %37 {offsets = [1, 0, 0], sizes = [1, 8, 8], strides = [1, 1, 1]} : vector<4x8x8xf32> to vector<1x8x8xf32>
    %42 = vector.shape_cast %41 : vector<1x8x8xf32> to vector<8x8xf32>
    %c0_22 = arith.constant 0 : index
    %c8 = arith.constant 8 : index
    %43 = vector.load %arg12[%c0_22, %c8] : memref<8x32xf32, #tpu.memory_space<vmem>>, vector<8x8xf32>
    tpu.vector_store %arg12[%c0_22, %c8], %42 {strides = array<i32>} : memref<8x32xf32, #tpu.memory_space<vmem>>, vector<8x8xf32>,
    %44 = vector.extract_strided_slice %37 {offsets = [2, 0, 0], sizes = [1, 8, 8], strides = [1, 1, 1]} : vector<4x8x8xf32> to vector<1x8x8xf32>
    %45 = vector.shape_cast %44 : vector<1x8x8xf32> to vector<8x8xf32>
    %c0_23 = arith.constant 0 : index
    %c16 = arith.constant 16 : index
    %46 = vector.load %arg12[%c0_23, %c16] : memref<8x32xf32, #tpu.memory_space<vmem>>, vector<8x8xf32>
    tpu.vector_store %arg12[%c0_23, %c16], %45 {strides = array<i32>} : memref<8x32xf32, #tpu.memory_space<vmem>>, vector<8x8xf32>,
    %47 = vector.extract_strided_slice %37 {offsets = [3, 0, 0], sizes = [1, 8, 8], strides = [1, 1, 1]} : vector<4x8x8xf32> to vector<1x8x8xf32>
    %48 = vector.shape_cast %47 : vector<1x8x8xf32> to vector<8x8xf32>
    %c0_24 = arith.constant 0 : index
    %c24 = arith.constant 24 : index
    %49 = vector.load %arg12[%c0_24, %c24] : memref<8x32xf32, #tpu.memory_space<vmem>>, vector<8x8xf32>
    tpu.vector_store %arg12[%c0_24, %c24], %48 {strides = array<i32>} : memref<8x32xf32, #tpu.memory_space<vmem>>, vector<8x8xf32>,
    %c0_25 = arith.constant 0 : index
    %c0_26 = arith.constant 0 : index
    %50 = vector.load %arg12[%c0_25, %c0_26] : memref<8x32xf32, #tpu.memory_space<vmem>>, vector<8x32xf32>
    %51 = arith.truncf %50 : vector<8x32xf32> to vector<8x32xbf16>
    %c0_27 = arith.constant 0 : index
    %c0_28 = arith.constant 0 : index
    %52 = vector.load %arg7[%c0_27, %c0_28] : memref<32x32xbf16, #tpu.memory_space<vmem>>, vector<32x32xbf16>
    %cst_29 = arith.constant dense<0.000000e+00> : vector<8x32xf32>
    %53 = tpu.matmul %51, %52, %cst_29 {dimension_numbers = #tpu.dot_dimension_numbers<[1], [0], [0], [1], [0, 0, 1, 1], [], []>} : vector<8x32xbf16>, vector<32x32xbf16>, vector<8x32xf32> -> vector<8x32xf32>
    %c0_30 = arith.constant 0 : index
    %c0_31 = arith.constant 0 : index
    %54 = vector.load %arg8[%c0_30, %c0_31] : memref<1x32xf32, #tpu.memory_space<vmem>>, vector<1x32xf32>
    %55 = vector.broadcast %54 : vector<1x32xf32> to vector<8x32xf32>
    %56 = arith.addf %53, %55 : vector<8x32xf32>
    %c0_32 = arith.constant 0 : index
    %c0_33 = arith.constant 0 : index
    %c0_34 = arith.constant 0 : index
    %57 = vector.load %arg6[%c0_32, %c0_33, %c0_34] : memref<1x8x32xbf16, #tpu.memory_space<vmem>>, vector<1x8x32xbf16>
    %58 = vector.shape_cast %57 : vector<1x8x32xbf16> to vector<8x32xbf16>
    %59 = arith.extf %58 : vector<8x32xbf16> to vector<8x32xf32>
    %60 = arith.addf %56, %59 : vector<8x32xf32>
    %cst_35 = arith.constant dense<0.000000e+00> : vector<8xf32>
    %61 = vector.multi_reduction <add>, %60, %cst_35 [1] : vector<8x32xf32> to vector<8xf32>
    %62 = vector.shape_cast %61 : vector<8xf32> to vector<8x1xf32>
    %cst_36 = arith.constant 3.200000e+01 : f32
    %63 = vector.broadcast %cst_36 : f32 to vector<8x1xf32>
    %64 = arith.divf %62, %63 : vector<8x1xf32>
    %65 = vector.broadcast %64 : vector<8x1xf32> to vector<8x32xf32>
    %66 = arith.subf %60, %65 : vector<8x32xf32>
    %67 = arith.mulf %66, %66 : vector<8x32xf32>
    %cst_37 = arith.constant dense<0.000000e+00> : vector<8xf32>
    %68 = vector.multi_reduction <add>, %67, %cst_37 [1] : vector<8x32xf32> to vector<8xf32>
    %69 = vector.shape_cast %68 : vector<8xf32> to vector<8x1xf32>
    %cst_38 = arith.constant 3.200000e+01 : f32
    %70 = vector.broadcast %cst_38 : f32 to vector<8x1xf32>
    %71 = arith.divf %69, %70 : vector<8x1xf32>
    %72 = vector.broadcast %64 : vector<8x1xf32> to vector<8x32xf32>
    %73 = arith.subf %60, %72 : vector<8x32xf32>
    %cst_39 = arith.constant 9.99999974E-6 : f32
    %74 = vector.broadcast %cst_39 : f32 to vector<8x1xf32>
    %75 = arith.addf %71, %74 : vector<8x1xf32>
    %76 = math.rsqrt %75 : vector<8x1xf32>
    %77 = vector.broadcast %76 : vector<8x1xf32> to vector<8x32xf32>
    %78 = arith.mulf %73, %77 : vector<8x32xf32>
    %c0_40 = arith.constant 0 : index
    %c0_41 = arith.constant 0 : index
    %79 = vector.load %arg9[%c0_40, %c0_41] : memref<1x32xf32, #tpu.memory_space<vmem>>, vector<1x32xf32>
    %80 = vector.broadcast %79 : vector<1x32xf32> to vector<8x32xf32>
    %81 = arith.mulf %78, %80 : vector<8x32xf32>
    %c0_42 = arith.constant 0 : index
    %c0_43 = arith.constant 0 : index
    %82 = vector.load %arg10[%c0_42, %c0_43] : memref<1x32xf32, #tpu.memory_space<vmem>>, vector<1x32xf32>
    %83 = vector.broadcast %82 : vector<1x32xf32> to vector<8x32xf32>
    %84 = arith.addf %81, %83 : vector<8x32xf32>
    %85 = arith.truncf %84 : vector<8x32xf32> to vector<8x32xbf16>
    %c0_44 = arith.constant 0 : index
    %c0_45 = arith.constant 0 : index
    %c0_46 = arith.constant 0 : index
    %86 = vector.load %arg11[%c0_44, %c0_45, %c0_46] : memref<1x8x32xbf16, #tpu.memory_space<vmem>>, vector<1x8x32xbf16>
    %87 = vector.shape_cast %86 : vector<1x8x32xbf16> to vector<8x32xbf16>
    %88 = vector.shape_cast %85 : vector<8x32xbf16> to vector<1x8x32xbf16>
    tpu.vector_store %arg11[%c0_44, %c0_45, %c0_46], %88 {strides = array<i32>} : memref<1x8x32xbf16, #tpu.memory_space<vmem>>, vector<1x8x32xbf16>,
    return
  }
  func.func @transform_0(%arg0: i32, %arg1: i32) -> (i32, i32, i32, i32) {
    %c0_i32 = arith.constant 0 : i32
    %c0_i32_0 = arith.constant 0 : i32
    %c0_i32_1 = arith.constant 0 : i32
    return %arg0, %c0_i32, %arg1, %c0_i32_0 : i32, i32, i32, i32
  }
  func.func @transform_1(%arg0: i32, %arg1: i32) -> (i32, i32, i32, i32) {
    %c0_i32 = arith.constant 0 : i32
    %c0_i32_0 = arith.constant 0 : i32
    %c0_i32_1 = arith.constant 0 : i32
    %c0_i32_2 = arith.constant 0 : i32
    return %arg0, %c0_i32, %c0_i32_0, %c0_i32_1 : i32, i32, i32, i32
  }
  func.func @transform_2(%arg0: i32, %arg1: i32) -> (i32, i32, i32, i32) {
    %c0_i32 = arith.constant 0 : i32
    %c0_i32_0 = arith.constant 0 : i32
    %c0_i32_1 = arith.constant 0 : i32
    %c0_i32_2 = arith.constant 0 : i32
    return %arg0, %c0_i32, %c0_i32_0, %c0_i32_1 : i32, i32, i32, i32
  }
  func.func @transform_3(%arg0: i32, %arg1: i32) -> (i32, i32, i32) {
    %c0_i32 = arith.constant 0 : i32
    %c0_i32_0 = arith.constant 0 : i32
    %c0_i32_1 = arith.constant 0 : i32
    return %arg0, %c0_i32, %c0_i32_0 : i32, i32, i32
  }
  func.func @transform_4(%arg0: i32, %arg1: i32) -> (i32, i32, i32) {
    %c0_i32 = arith.constant 0 : i32
    %c0_i32_0 = arith.constant 0 : i32
    return %arg0, %arg1, %c0_i32 : i32, i32, i32
  }
  func.func @transform_5(%arg0: i32, %arg1: i32) -> (i32, i32) {
    %c0_i32 = arith.constant 0 : i32
    %c0_i32_0 = arith.constant 0 : i32
    %c0_i32_1 = arith.constant 0 : i32
    return %c0_i32, %c0_i32_0 : i32, i32
  }
  func.func @transform_6(%arg0: i32, %arg1: i32) -> (i32, i32) {
    %c0_i32 = arith.constant 0 : i32
    %c0_i32_0 = arith.constant 0 : i32
    %c0_i32_1 = arith.constant 0 : i32
    return %c0_i32, %c0_i32_0 : i32, i32
  }
  func.func @transform_7(%arg0: i32, %arg1: i32) -> (i32, i32) {
    %c0_i32 = arith.constant 0 : i32
    %c0_i32_0 = arith.constant 0 : i32
    %c0_i32_1 = arith.constant 0 : i32
    return %c0_i32, %c0_i32_0 : i32, i32
  }
  func.func @transform_8(%arg0: i32, %arg1: i32) -> (i32, i32) {
    %c0_i32 = arith.constant 0 : i32
    %c0_i32_0 = arith.constant 0 : i32
    %c0_i32_1 = arith.constant 0 : i32
    return %c0_i32, %c0_i32_0 : i32, i32
  }
  func.func @transform_9(%arg0: i32, %arg1: i32) -> (i32, i32, i32) {
    %c0_i32 = arith.constant 0 : i32
    %c0_i32_0 = arith.constant 0 : i32
    return %arg0, %arg1, %c0_i32 : i32, i32, i32
  }
}

module attributes {stable_mosaic.version = 11 : i64} {
  func.func @_linear_kernel(%arg0: i32, %arg1: i32, %arg2: i32, %arg3: memref<16x32xbf16, #tpu.memory_space<vmem>>, %arg4: memref<32x32xbf16, #tpu.memory_space<vmem>>, %arg5: memref<1x32xf32, #tpu.memory_space<vmem>>, %arg6: memref<16x32xbf16, #tpu.memory_space<vmem>>, %arg7: memref<16x32xf32, #tpu.memory_space<vmem>>) attributes {dimension_semantics = [#tpu.dimension_semantics<parallel>, #tpu.dimension_semantics<parallel>, #tpu.dimension_semantics<arbitrary>], iteration_bounds = array<i64: 1, 1, 1>, scalar_prefetch = 0 : i64, scratch_operands = 1 : i64, tpu.core_type = #tpu.core_type<tc>, window_params = [{transform_indices = @transform_0, window_bounds = array<i64: 16, 32>}, {transform_indices = @transform_1, window_bounds = array<i64: 32, 32>}, {transform_indices = @transform_2, window_bounds = array<i64: 1, 32>}, {transform_indices = @transform_3, window_bounds = array<i64: 16, 32>}]} {
    %c0_i32 = arith.constant 0 : i32
    %0 = arith.cmpi eq, %arg2, %c0_i32 : i32
    %1 = arith.extui %0 : i1 to i32
    %c0_i32_0 = arith.constant 0 : i32
    %2 = arith.cmpi ne, %1, %c0_i32_0 : i32
    scf.if %2 {
      %cst_10 = arith.constant 0.000000e+00 : f32
      %12 = vector.broadcast %cst_10 : f32 to vector<16x32xf32>
      %c0_11 = arith.constant 0 : index
      %c0_12 = arith.constant 0 : index
      %13 = vector.load %arg7[%c0_11, %c0_12] : memref<16x32xf32, #tpu.memory_space<vmem>>, vector<16x32xf32>
      tpu.vector_store %arg7[%c0_11, %c0_12], %12 {strides = array<i32>} : memref<16x32xf32, #tpu.memory_space<vmem>>, vector<16x32xf32>,
    } else {
    }
    %c0 = arith.constant 0 : index
    %c0_1 = arith.constant 0 : index
    %3 = vector.load %arg7[%c0, %c0_1] : memref<16x32xf32, #tpu.memory_space<vmem>>, vector<16x32xf32>
    %c0_2 = arith.constant 0 : index
    %c0_3 = arith.constant 0 : index
    %4 = vector.load %arg3[%c0_2, %c0_3] : memref<16x32xbf16, #tpu.memory_space<vmem>>, vector<16x32xbf16>
    %c0_4 = arith.constant 0 : index
    %c0_5 = arith.constant 0 : index
    %5 = vector.load %arg4[%c0_4, %c0_5] : memref<32x32xbf16, #tpu.memory_space<vmem>>, vector<32x32xbf16>
    %cst = arith.constant dense<0.000000e+00> : vector<16x32xf32>
    %6 = tpu.matmul %4, %5, %cst {dimension_numbers = #tpu.dot_dimension_numbers<[1], [0], [0], [1], [0, 0, 1, 1], [], []>} : vector<16x32xbf16>, vector<32x32xbf16>, vector<16x32xf32> -> vector<16x32xf32>
    %7 = arith.addf %3, %6 : vector<16x32xf32>
    %c0_6 = arith.constant 0 : index
    %c0_7 = arith.constant 0 : index
    %8 = vector.load %arg7[%c0_6, %c0_7] : memref<16x32xf32, #tpu.memory_space<vmem>>, vector<16x32xf32>
    tpu.vector_store %arg7[%c0_6, %c0_7], %7 {strides = array<i32>} : memref<16x32xf32, #tpu.memory_space<vmem>>, vector<16x32xf32>,
    %c0_i32_8 = arith.constant 0 : i32
    %9 = arith.cmpi eq, %arg2, %c0_i32_8 : i32
    %10 = arith.extui %9 : i1 to i32
    %c0_i32_9 = arith.constant 0 : i32
    %11 = arith.cmpi ne, %10, %c0_i32_9 : i32
    scf.if %11 {
      %c0_10 = arith.constant 0 : index
      %c0_11 = arith.constant 0 : index
      %12 = vector.load %arg7[%c0_10, %c0_11] : memref<16x32xf32, #tpu.memory_space<vmem>>, vector<16x32xf32>
      %c0_12 = arith.constant 0 : index
      %c0_13 = arith.constant 0 : index
      %13 = vector.load %arg5[%c0_12, %c0_13] : memref<1x32xf32, #tpu.memory_space<vmem>>, vector<1x32xf32>
      %14 = vector.broadcast %13 : vector<1x32xf32> to vector<16x32xf32>
      %15 = arith.addf %12, %14 : vector<16x32xf32>
      %16 = arith.truncf %15 : vector<16x32xf32> to vector<16x32xbf16>
      %c0_14 = arith.constant 0 : index
      %c0_15 = arith.constant 0 : index
      %17 = vector.load %arg6[%c0_14, %c0_15] : memref<16x32xbf16, #tpu.memory_space<vmem>>, vector<16x32xbf16>
      tpu.vector_store %arg6[%c0_14, %c0_15], %16 {strides = array<i32>} : memref<16x32xbf16, #tpu.memory_space<vmem>>, vector<16x32xbf16>,
    } else {
    }
    return
  }
  func.func @transform_0(%arg0: i32, %arg1: i32, %arg2: i32) -> (i32, i32) {
    %c0_i32 = arith.constant 0 : i32
    return %arg0, %arg2 : i32, i32
  }
  func.func @transform_1(%arg0: i32, %arg1: i32, %arg2: i32) -> (i32, i32) {
    %c0_i32 = arith.constant 0 : i32
    return %arg2, %arg1 : i32, i32
  }
  func.func @transform_2(%arg0: i32, %arg1: i32, %arg2: i32) -> (i32, i32) {
    %c0_i32 = arith.constant 0 : i32
    %c0_i32_0 = arith.constant 0 : i32
    return %c0_i32, %arg1 : i32, i32
  }
  func.func @transform_3(%arg0: i32, %arg1: i32, %arg2: i32) -> (i32, i32) {
    %c0_i32 = arith.constant 0 : i32
    return %arg0, %arg1 : i32, i32
  }
}

module attributes {stable_mosaic.version = 11 : i64} {
  func.func @_attn_block_kernel(%arg0: i32, %arg1: i32, %arg2: memref<1x4x8x8xbf16, #tpu.memory_space<vmem>>, %arg3: memref<1x4x8x8xbf16, #tpu.memory_space<vmem>>, %arg4: memref<1x4x8x8xbf16, #tpu.memory_space<vmem>>, %arg5: memref<1x1x8xf32, #tpu.memory_space<vmem>>, %arg6: memref<1x8x32xbf16, #tpu.memory_space<vmem>>, %arg7: memref<32x32xbf16, #tpu.memory_space<vmem>>, %arg8: memref<1x32xf32, #tpu.memory_space<vmem>>, %arg9: memref<1x32xf32, #tpu.memory_space<vmem>>, %arg10: memref<1x32xf32, #tpu.memory_space<vmem>>, %arg11: memref<1x8x32xbf16, #tpu.memory_space<vmem>>, %arg12: memref<8x32xf32, #tpu.memory_space<vmem>>) attributes {dimension_semantics = [#tpu.dimension_semantics<parallel>, #tpu.dimension_semantics<parallel>], iteration_bounds = array<i64: 2, 1>, scalar_prefetch = 0 : i64, scratch_operands = 1 : i64, tpu.core_type = #tpu.core_type<tc>, window_params = [{transform_indices = @transform_0, window_bounds = array<i64: 1, 4, 8, 8>}, {transform_indices = @transform_1, window_bounds = array<i64: 1, 4, 8, 8>}, {transform_indices = @transform_2, window_bounds = array<i64: 1, 4, 8, 8>}, {transform_indices = @transform_3, window_bounds = array<i64: 1, 1, 8>}, {transform_indices = @transform_4, window_bounds = array<i64: 1, 8, 32>}, {pipeline_mode = #tpu.pipeline_mode<synchronous>, transform_indices = @transform_5, window_bounds = array<i64: 32, 32>}, {pipeline_mode = #tpu.pipeline_mode<synchronous>, transform_indices = @transform_6, window_bounds = array<i64: 1, 32>}, {pipeline_mode = #tpu.pipeline_mode<synchronous>, transform_indices = @transform_7, window_bounds = array<i64: 1, 32>}, {pipeline_mode = #tpu.pipeline_mode<synchronous>, transform_indices = @transform_8, window_bounds = array<i64: 1, 32>}, {transform_indices = @transform_9, window_bounds = array<i64: 1, 8, 32>}]} {
    %c0 = arith.constant 0 : index
    %c0_0 = arith.constant 0 : index
    %c0_1 = arith.constant 0 : index
    %c0_2 = arith.constant 0 : index
    %0 = vector.load %arg2[%c0, %c0_0, %c0_1, %c0_2] : memref<1x4x8x8xbf16, #tpu.memory_space<vmem>>, vector<1x4x8x8xbf16>
    %1 = vector.shape_cast %0 : vector<1x4x8x8xbf16> to vector<4x8x8xbf16>
    %c0_3 = arith.constant 0 : index
    %c0_4 = arith.constant 0 : index
    %c0_5 = arith.constant 0 : index
    %c0_6 = arith.constant 0 : index
    %2 = vector.load %arg3[%c0_3, %c0_4, %c0_5, %c0_6] : memref<1x4x8x8xbf16, #tpu.memory_space<vmem>>, vector<1x4x8x8xbf16>
    %3 = vector.shape_cast %2 : vector<1x4x8x8xbf16> to vector<4x8x8xbf16>
    %c0_7 = arith.constant 0 : index
    %c0_8 = arith.constant 0 : index
    %c0_9 = arith.constant 0 : index
    %c0_10 = arith.constant 0 : index
    %4 = vector.load %arg4[%c0_7, %c0_8, %c0_9, %c0_10] : memref<1x4x8x8xbf16, #tpu.memory_space<vmem>>, vector<1x4x8x8xbf16>
    %5 = vector.shape_cast %4 : vector<1x4x8x8xbf16> to vector<4x8x8xbf16>
    %c0_11 = arith.constant 0 : index
    %c0_12 = arith.constant 0 : index
    %c0_13 = arith.constant 0 : index
    %6 = vector.load %arg5[%c0_11, %c0_12, %c0_13] : memref<1x1x8xf32, #tpu.memory_space<vmem>>, vector<1x1x8xf32>
    %7 = vector.shape_cast %6 : vector<1x1x8xf32> to vector<1x8xf32>
    %cst = arith.constant 0.000000e+00 : f32
    %8 = vector.broadcast %cst : f32 to vector<1x8xf32>
    %9 = arith.cmpf one, %7, %8 : vector<1x8xf32>
    %10 = vector.shape_cast %9 : vector<1x8xi1> to vector<1x1x8xi1>
    %cst_14 = arith.constant dense<0.000000e+00> : vector<4x8x8xf32>
    %11 = tpu.matmul %1, %3, %cst_14 {dimension_numbers = #tpu.dot_dimension_numbers<[2], [2], [1], [1], [0, 0, 0, 1, 1, 1], [0], [0]>} : vector<4x8x8xbf16>, vector<4x8x8xbf16>, vector<4x8x8xf32> -> vector<4x8x8xf32>
    %cst_15 = arith.constant -1.000000e+20 : f32
    %12 = vector.shape_cast %10 : vector<1x1x8xi1> to vector<1x1x8xi1>
    %13 = vector.broadcast %12 : vector<1x1x8xi1> to vector<4x8x8xi1>
    %14 = vector.broadcast %cst_15 : f32 to vector<4x8x8xf32>
    %15 = arith.select %13, %11, %14 : vector<4x8x8xi1>, vector<4x8x8xf32>
    %cst_16 = arith.constant 0.176776692 : f32
    %16 = vector.broadcast %cst_16 : f32 to vector<4x8x8xf32>
    %17 = arith.mulf %15, %16 : vector<4x8x8xf32>
    %cst_17 = arith.constant dense<0xFF800000> : vector<4x8xf32>
    %18 = vector.multi_reduction <maximumf>, %17, %cst_17 [2] : vector<4x8x8xf32> to vector<4x8xf32>
    %19 = vector.shape_cast %18 : vector<4x8xf32> to vector<4x8x1xf32>
    %20 = vector.broadcast %19 : vector<4x8x1xf32> to vector<4x8x8xf32>
    %21 = arith.subf %17, %20 : vector<4x8x8xf32>
    %22 = math.exp %21 : vector<4x8x8xf32>
    %cst_18 = arith.constant dense<0.000000e+00> : vector<4x8xf32>
    %23 = vector.multi_reduction <add>, %22, %cst_18 [2] : vector<4x8x8xf32> to vector<4x8xf32>
    %24 = vector.shape_cast %23 : vector<4x8xf32> to vector<4x8x1xf32>
    %25 = tpu.reciprocal %24 : vector<4x8x1xf32> -> vector<4x8x1xf32>
    %26 = vector.broadcast %25 : vector<4x8x1xf32> to vector<4x8x8xf32>
    %27 = arith.mulf %22, %26 : vector<4x8x8xf32>
    %28 = arith.truncf %27 : vector<4x8x8xf32> to vector<4x8x8xbf16>
    %cst_19 = arith.constant dense<0.000000e+00> : vector<4x8x8xf32>
    %29 = tpu.matmul %28, %5, %cst_19 {dimension_numbers = #tpu.dot_dimension_numbers<[2], [1], [1], [2], [0, 0, 0, 1, 1, 2], [0], [0]>} : vector<4x8x8xbf16>, vector<4x8x8xbf16>, vector<4x8x8xf32> -> vector<4x8x8xf32>
    %30 = vector.extract_strided_slice %29 {offsets = [0, 0, 0], sizes = [1, 8, 8], strides = [1, 1, 1]} : vector<4x8x8xf32> to vector<1x8x8xf32>
    %31 = vector.shape_cast %30 : vector<1x8x8xf32> to vector<8x8xf32>
    %c0_20 = arith.constant 0 : index
    %c0_21 = arith.constant 0 : index
    %32 = vector.load %arg12[%c0_20, %c0_21] : memref<8x32xf32, #tpu.memory_space<vmem>>, vector<8x8xf32>
    tpu.vector_store %arg12[%c0_20, %c0_21], %31 {strides = array<i32>} : memref<8x32xf32, #tpu.memory_space<vmem>>, vector<8x8xf32>,
    %33 = vector.extract_strided_slice %29 {offsets = [1, 0, 0], sizes = [1, 8, 8], strides = [1, 1, 1]} : vector<4x8x8xf32> to vector<1x8x8xf32>
    %34 = vector.shape_cast %33 : vector<1x8x8xf32> to vector<8x8xf32>
    %c0_22 = arith.constant 0 : index
    %c8 = arith.constant 8 : index
    %35 = vector.load %arg12[%c0_22, %c8] : memref<8x32xf32, #tpu.memory_space<vmem>>, vector<8x8xf32>
    tpu.vector_store %arg12[%c0_22, %c8], %34 {strides = array<i32>} : memref<8x32xf32, #tpu.memory_space<vmem>>, vector<8x8xf32>,
    %36 = vector.extract_strided_slice %29 {offsets = [2, 0, 0], sizes = [1, 8, 8], strides = [1, 1, 1]} : vector<4x8x8xf32> to vector<1x8x8xf32>
    %37 = vector.shape_cast %36 : vector<1x8x8xf32> to vector<8x8xf32>
    %c0_23 = arith.constant 0 : index
    %c16 = arith.constant 16 : index
    %38 = vector.load %arg12[%c0_23, %c16] : memref<8x32xf32, #tpu.memory_space<vmem>>, vector<8x8xf32>
    tpu.vector_store %arg12[%c0_23, %c16], %37 {strides = array<i32>} : memref<8x32xf32, #tpu.memory_space<vmem>>, vector<8x8xf32>,
    %39 = vector.extract_strided_slice %29 {offsets = [3, 0, 0], sizes = [1, 8, 8], strides = [1, 1, 1]} : vector<4x8x8xf32> to vector<1x8x8xf32>
    %40 = vector.shape_cast %39 : vector<1x8x8xf32> to vector<8x8xf32>
    %c0_24 = arith.constant 0 : index
    %c24 = arith.constant 24 : index
    %41 = vector.load %arg12[%c0_24, %c24] : memref<8x32xf32, #tpu.memory_space<vmem>>, vector<8x8xf32>
    tpu.vector_store %arg12[%c0_24, %c24], %40 {strides = array<i32>} : memref<8x32xf32, #tpu.memory_space<vmem>>, vector<8x8xf32>,
    %c0_25 = arith.constant 0 : index
    %c0_26 = arith.constant 0 : index
    %42 = vector.load %arg12[%c0_25, %c0_26] : memref<8x32xf32, #tpu.memory_space<vmem>>, vector<8x32xf32>
    %43 = arith.truncf %42 : vector<8x32xf32> to vector<8x32xbf16>
    %c0_27 = arith.constant 0 : index
    %c0_28 = arith.constant 0 : index
    %44 = vector.load %arg7[%c0_27, %c0_28] : memref<32x32xbf16, #tpu.memory_space<vmem>>, vector<32x32xbf16>
    %cst_29 = arith.constant dense<0.000000e+00> : vector<8x32xf32>
    %45 = tpu.matmul %43, %44, %cst_29 {dimension_numbers = #tpu.dot_dimension_numbers<[1], [0], [0], [1], [0, 0, 1, 1], [], []>} : vector<8x32xbf16>, vector<32x32xbf16>, vector<8x32xf32> -> vector<8x32xf32>
    %c0_30 = arith.constant 0 : index
    %c0_31 = arith.constant 0 : index
    %46 = vector.load %arg8[%c0_30, %c0_31] : memref<1x32xf32, #tpu.memory_space<vmem>>, vector<1x32xf32>
    %47 = vector.broadcast %46 : vector<1x32xf32> to vector<8x32xf32>
    %48 = arith.addf %45, %47 : vector<8x32xf32>
    %c0_32 = arith.constant 0 : index
    %c0_33 = arith.constant 0 : index
    %c0_34 = arith.constant 0 : index
    %49 = vector.load %arg6[%c0_32, %c0_33, %c0_34] : memref<1x8x32xbf16, #tpu.memory_space<vmem>>, vector<1x8x32xbf16>
    %50 = vector.shape_cast %49 : vector<1x8x32xbf16> to vector<8x32xbf16>
    %51 = arith.extf %50 : vector<8x32xbf16> to vector<8x32xf32>
    %52 = arith.addf %48, %51 : vector<8x32xf32>
    %cst_35 = arith.constant dense<0.000000e+00> : vector<8xf32>
    %53 = vector.multi_reduction <add>, %52, %cst_35 [1] : vector<8x32xf32> to vector<8xf32>
    %54 = vector.shape_cast %53 : vector<8xf32> to vector<8x1xf32>
    %cst_36 = arith.constant 3.200000e+01 : f32
    %55 = vector.broadcast %cst_36 : f32 to vector<8x1xf32>
    %56 = arith.divf %54, %55 : vector<8x1xf32>
    %57 = vector.broadcast %56 : vector<8x1xf32> to vector<8x32xf32>
    %58 = arith.subf %52, %57 : vector<8x32xf32>
    %59 = arith.mulf %58, %58 : vector<8x32xf32>
    %cst_37 = arith.constant dense<0.000000e+00> : vector<8xf32>
    %60 = vector.multi_reduction <add>, %59, %cst_37 [1] : vector<8x32xf32> to vector<8xf32>
    %61 = vector.shape_cast %60 : vector<8xf32> to vector<8x1xf32>
    %cst_38 = arith.constant 3.200000e+01 : f32
    %62 = vector.broadcast %cst_38 : f32 to vector<8x1xf32>
    %63 = arith.divf %61, %62 : vector<8x1xf32>
    %64 = vector.broadcast %56 : vector<8x1xf32> to vector<8x32xf32>
    %65 = arith.subf %52, %64 : vector<8x32xf32>
    %cst_39 = arith.constant 9.99999974E-6 : f32
    %66 = vector.broadcast %cst_39 : f32 to vector<8x1xf32>
    %67 = arith.addf %63, %66 : vector<8x1xf32>
    %68 = math.rsqrt %67 : vector<8x1xf32>
    %69 = vector.broadcast %68 : vector<8x1xf32> to vector<8x32xf32>
    %70 = arith.mulf %65, %69 : vector<8x32xf32>
    %c0_40 = arith.constant 0 : index
    %c0_41 = arith.constant 0 : index
    %71 = vector.load %arg9[%c0_40, %c0_41] : memref<1x32xf32, #tpu.memory_space<vmem>>, vector<1x32xf32>
    %72 = vector.broadcast %71 : vector<1x32xf32> to vector<8x32xf32>
    %73 = arith.mulf %70, %72 : vector<8x32xf32>
    %c0_42 = arith.constant 0 : index
    %c0_43 = arith.constant 0 : index
    %74 = vector.load %arg10[%c0_42, %c0_43] : memref<1x32xf32, #tpu.memory_space<vmem>>, vector<1x32xf32>
    %75 = vector.broadcast %74 : vector<1x32xf32> to vector<8x32xf32>
    %76 = arith.addf %73, %75 : vector<8x32xf32>
    %77 = arith.truncf %76 : vector<8x32xf32> to vector<8x32xbf16>
    %c0_44 = arith.constant 0 : index
    %c0_45 = arith.constant 0 : index
    %c0_46 = arith.constant 0 : index
    %78 = vector.load %arg11[%c0_44, %c0_45, %c0_46] : memref<1x8x32xbf16, #tpu.memory_space<vmem>>, vector<1x8x32xbf16>
    %79 = vector.shape_cast %78 : vector<1x8x32xbf16> to vector<8x32xbf16>
    %80 = vector.shape_cast %77 : vector<8x32xbf16> to vector<1x8x32xbf16>
    tpu.vector_store %arg11[%c0_44, %c0_45, %c0_46], %80 {strides = array<i32>} : memref<1x8x32xbf16, #tpu.memory_space<vmem>>, vector<1x8x32xbf16>,
    return
  }
  func.func @transform_0(%arg0: i32, %arg1: i32) -> (i32, i32, i32, i32) {
    %c0_i32 = arith.constant 0 : i32
    %c0_i32_0 = arith.constant 0 : i32
    %c0_i32_1 = arith.constant 0 : i32
    return %arg0, %c0_i32, %arg1, %c0_i32_0 : i32, i32, i32, i32
  }
  func.func @transform_1(%arg0: i32, %arg1: i32) -> (i32, i32, i32, i32) {
    %c0_i32 = arith.constant 0 : i32
    %c0_i32_0 = arith.constant 0 : i32
    %c0_i32_1 = arith.constant 0 : i32
    %c0_i32_2 = arith.constant 0 : i32
    return %arg0, %c0_i32, %c0_i32_0, %c0_i32_1 : i32, i32, i32, i32
  }
  func.func @transform_2(%arg0: i32, %arg1: i32) -> (i32, i32, i32, i32) {
    %c0_i32 = arith.constant 0 : i32
    %c0_i32_0 = arith.constant 0 : i32
    %c0_i32_1 = arith.constant 0 : i32
    %c0_i32_2 = arith.constant 0 : i32
    return %arg0, %c0_i32, %c0_i32_0, %c0_i32_1 : i32, i32, i32, i32
  }
  func.func @transform_3(%arg0: i32, %arg1: i32) -> (i32, i32, i32) {
    %c0_i32 = arith.constant 0 : i32
    %c0_i32_0 = arith.constant 0 : i32
    %c0_i32_1 = arith.constant 0 : i32
    return %arg0, %c0_i32, %c0_i32_0 : i32, i32, i32
  }
  func.func @transform_4(%arg0: i32, %arg1: i32) -> (i32, i32, i32) {
    %c0_i32 = arith.constant 0 : i32
    %c0_i32_0 = arith.constant 0 : i32
    return %arg0, %arg1, %c0_i32 : i32, i32, i32
  }
  func.func @transform_5(%arg0: i32, %arg1: i32) -> (i32, i32) {
    %c0_i32 = arith.constant 0 : i32
    %c0_i32_0 = arith.constant 0 : i32
    %c0_i32_1 = arith.constant 0 : i32
    return %c0_i32, %c0_i32_0 : i32, i32
  }
  func.func @transform_6(%arg0: i32, %arg1: i32) -> (i32, i32) {
    %c0_i32 = arith.constant 0 : i32
    %c0_i32_0 = arith.constant 0 : i32
    %c0_i32_1 = arith.constant 0 : i32
    return %c0_i32, %c0_i32_0 : i32, i32
  }
  func.func @transform_7(%arg0: i32, %arg1: i32) -> (i32, i32) {
    %c0_i32 = arith.constant 0 : i32
    %c0_i32_0 = arith.constant 0 : i32
    %c0_i32_1 = arith.constant 0 : i32
    return %c0_i32, %c0_i32_0 : i32, i32
  }
  func.func @transform_8(%arg0: i32, %arg1: i32) -> (i32, i32) {
    %c0_i32 = arith.constant 0 : i32
    %c0_i32_0 = arith.constant 0 : i32
    %c0_i32_1 = arith.constant 0 : i32
    return %c0_i32, %c0_i32_0 : i32, i32
  }
  func.func @transform_9(%arg0: i32, %arg1: i32) -> (i32, i32, i32) {
    %c0_i32 = arith.constant 0 : i32
    %c0_i32_0 = arith.constant 0 : i32
    return %arg0, %arg1, %c0_i32 : i32, i32, i32
  }
}

module attributes {stable_mosaic.version = 11 : i64} {
  func.func @_ffn_block_kernel(%arg0: i32, %arg1: i32, %arg2: memref<16x32xbf16, #tpu.memory_space<vmem>>, %arg3: memref<32x64xbf16, #tpu.memory_space<vmem>>, %arg4: memref<1x64xf32, #tpu.memory_space<vmem>>, %arg5: memref<64x32xbf16, #tpu.memory_space<vmem>>, %arg6: memref<1x32xf32, #tpu.memory_space<vmem>>, %arg7: memref<1x32xf32, #tpu.memory_space<vmem>>, %arg8: memref<1x32xf32, #tpu.memory_space<vmem>>, %arg9: memref<16x32xbf16, #tpu.memory_space<vmem>>, %arg10: memref<16x32xf32, #tpu.memory_space<vmem>>) attributes {dimension_semantics = [#tpu.dimension_semantics<parallel>, #tpu.dimension_semantics<arbitrary>], iteration_bounds = array<i64: 1, 1>, scalar_prefetch = 0 : i64, scratch_operands = 1 : i64, tpu.core_type = #tpu.core_type<tc>, window_params = [{transform_indices = @transform_0, window_bounds = array<i64: 16, 32>}, {transform_indices = @transform_1, window_bounds = array<i64: 32, 64>}, {transform_indices = @transform_2, window_bounds = array<i64: 1, 64>}, {transform_indices = @transform_3, window_bounds = array<i64: 64, 32>}, {pipeline_mode = #tpu.pipeline_mode<synchronous>, transform_indices = @transform_4, window_bounds = array<i64: 1, 32>}, {pipeline_mode = #tpu.pipeline_mode<synchronous>, transform_indices = @transform_5, window_bounds = array<i64: 1, 32>}, {pipeline_mode = #tpu.pipeline_mode<synchronous>, transform_indices = @transform_6, window_bounds = array<i64: 1, 32>}, {transform_indices = @transform_7, window_bounds = array<i64: 16, 32>}]} {
    %c0_i32 = arith.constant 0 : i32
    %0 = arith.cmpi eq, %arg1, %c0_i32 : i32
    %1 = arith.extui %0 : i1 to i32
    %c0_i32_0 = arith.constant 0 : i32
    %2 = arith.cmpi ne, %1, %c0_i32_0 : i32
    scf.if %2 {
      %cst_16 = arith.constant 0.000000e+00 : f32
      %20 = vector.broadcast %cst_16 : f32 to vector<16x32xf32>
      %c0_17 = arith.constant 0 : index
      %c0_18 = arith.constant 0 : index
      %21 = vector.load %arg10[%c0_17, %c0_18] : memref<16x32xf32, #tpu.memory_space<vmem>>, vector<16x32xf32>
      tpu.vector_store %arg10[%c0_17, %c0_18], %20 {strides = array<i32>} : memref<16x32xf32, #tpu.memory_space<vmem>>, vector<16x32xf32>,
    } else {
    }
    %c0 = arith.constant 0 : index
    %c0_1 = arith.constant 0 : index
    %3 = vector.load %arg2[%c0, %c0_1] : memref<16x32xbf16, #tpu.memory_space<vmem>>, vector<16x32xbf16>
    %c0_2 = arith.constant 0 : index
    %c0_3 = arith.constant 0 : index
    %4 = vector.load %arg3[%c0_2, %c0_3] : memref<32x64xbf16, #tpu.memory_space<vmem>>, vector<32x64xbf16>
    %cst = arith.constant dense<0.000000e+00> : vector<16x64xf32>
    %5 = tpu.matmul %3, %4, %cst {dimension_numbers = #tpu.dot_dimension_numbers<[1], [0], [0], [1], [0, 0, 1, 1], [], []>} : vector<16x32xbf16>, vector<32x64xbf16>, vector<16x64xf32> -> vector<16x64xf32>
    %c0_4 = arith.constant 0 : index
    %c0_5 = arith.constant 0 : index
    %6 = vector.load %arg4[%c0_4, %c0_5] : memref<1x64xf32, #tpu.memory_space<vmem>>, vector<1x64xf32>
    %7 = vector.broadcast %6 : vector<1x64xf32> to vector<16x64xf32>
    %8 = arith.addf %5, %7 : vector<16x64xf32>
    %cst_6 = arith.constant 0.000000e+00 : f32
    %9 = vector.broadcast %cst_6 : f32 to vector<16x64xf32>
    %10 = arith.maximumf %8, %9 : vector<16x64xf32>
    %c0_7 = arith.constant 0 : index
    %c0_8 = arith.constant 0 : index
    %11 = vector.load %arg10[%c0_7, %c0_8] : memref<16x32xf32, #tpu.memory_space<vmem>>, vector<16x32xf32>
    %12 = arith.truncf %10 : vector<16x64xf32> to vector<16x64xbf16>
    %c0_9 = arith.constant 0 : index
    %c0_10 = arith.constant 0 : index
    %13 = vector.load %arg5[%c0_9, %c0_10] : memref<64x32xbf16, #tpu.memory_space<vmem>>, vector<64x32xbf16>
    %cst_11 = arith.constant dense<0.000000e+00> : vector<16x32xf32>
    %14 = tpu.matmul %12, %13, %cst_11 {dimension_numbers = #tpu.dot_dimension_numbers<[1], [0], [0], [1], [0, 0, 1, 1], [], []>} : vector<16x64xbf16>, vector<64x32xbf16>, vector<16x32xf32> -> vector<16x32xf32>
    %15 = arith.addf %11, %14 : vector<16x32xf32>
    %c0_12 = arith.constant 0 : index
    %c0_13 = arith.constant 0 : index
    %16 = vector.load %arg10[%c0_12, %c0_13] : memref<16x32xf32, #tpu.memory_space<vmem>>, vector<16x32xf32>
    tpu.vector_store %arg10[%c0_12, %c0_13], %15 {strides = array<i32>} : memref<16x32xf32, #tpu.memory_space<vmem>>, vector<16x32xf32>,
    %c0_i32_14 = arith.constant 0 : i32
    %17 = arith.cmpi eq, %arg1, %c0_i32_14 : i32
    %18 = arith.extui %17 : i1 to i32
    %c0_i32_15 = arith.constant 0 : i32
    %19 = arith.cmpi ne, %18, %c0_i32_15 : i32
    scf.if %19 {
      %c0_16 = arith.constant 0 : index
      %c0_17 = arith.constant 0 : index
      %20 = vector.load %arg10[%c0_16, %c0_17] : memref<16x32xf32, #tpu.memory_space<vmem>>, vector<16x32xf32>
      %c0_18 = arith.constant 0 : index
      %c0_19 = arith.constant 0 : index
      %21 = vector.load %arg6[%c0_18, %c0_19] : memref<1x32xf32, #tpu.memory_space<vmem>>, vector<1x32xf32>
      %22 = vector.broadcast %21 : vector<1x32xf32> to vector<16x32xf32>
      %23 = arith.addf %20, %22 : vector<16x32xf32>
      %24 = arith.extf %3 : vector<16x32xbf16> to vector<16x32xf32>
      %25 = arith.addf %23, %24 : vector<16x32xf32>
      %cst_20 = arith.constant dense<0.000000e+00> : vector<16xf32>
      %26 = vector.multi_reduction <add>, %25, %cst_20 [1] : vector<16x32xf32> to vector<16xf32>
      %27 = vector.shape_cast %26 : vector<16xf32> to vector<16x1xf32>
      %cst_21 = arith.constant 3.200000e+01 : f32
      %28 = vector.broadcast %cst_21 : f32 to vector<16x1xf32>
      %29 = arith.divf %27, %28 : vector<16x1xf32>
      %30 = vector.broadcast %29 : vector<16x1xf32> to vector<16x32xf32>
      %31 = arith.subf %25, %30 : vector<16x32xf32>
      %32 = arith.mulf %31, %31 : vector<16x32xf32>
      %cst_22 = arith.constant dense<0.000000e+00> : vector<16xf32>
      %33 = vector.multi_reduction <add>, %32, %cst_22 [1] : vector<16x32xf32> to vector<16xf32>
      %34 = vector.shape_cast %33 : vector<16xf32> to vector<16x1xf32>
      %cst_23 = arith.constant 3.200000e+01 : f32
      %35 = vector.broadcast %cst_23 : f32 to vector<16x1xf32>
      %36 = arith.divf %34, %35 : vector<16x1xf32>
      %37 = vector.broadcast %29 : vector<16x1xf32> to vector<16x32xf32>
      %38 = arith.subf %25, %37 : vector<16x32xf32>
      %cst_24 = arith.constant 9.99999974E-6 : f32
      %39 = vector.broadcast %cst_24 : f32 to vector<16x1xf32>
      %40 = arith.addf %36, %39 : vector<16x1xf32>
      %41 = math.rsqrt %40 : vector<16x1xf32>
      %42 = vector.broadcast %41 : vector<16x1xf32> to vector<16x32xf32>
      %43 = arith.mulf %38, %42 : vector<16x32xf32>
      %c0_25 = arith.constant 0 : index
      %c0_26 = arith.constant 0 : index
      %44 = vector.load %arg7[%c0_25, %c0_26] : memref<1x32xf32, #tpu.memory_space<vmem>>, vector<1x32xf32>
      %45 = vector.broadcast %44 : vector<1x32xf32> to vector<16x32xf32>
      %46 = arith.mulf %43, %45 : vector<16x32xf32>
      %c0_27 = arith.constant 0 : index
      %c0_28 = arith.constant 0 : index
      %47 = vector.load %arg8[%c0_27, %c0_28] : memref<1x32xf32, #tpu.memory_space<vmem>>, vector<1x32xf32>
      %48 = vector.broadcast %47 : vector<1x32xf32> to vector<16x32xf32>
      %49 = arith.addf %46, %48 : vector<16x32xf32>
      %50 = arith.truncf %49 : vector<16x32xf32> to vector<16x32xbf16>
      %c0_29 = arith.constant 0 : index
      %c0_30 = arith.constant 0 : index
      %51 = vector.load %arg9[%c0_29, %c0_30] : memref<16x32xbf16, #tpu.memory_space<vmem>>, vector<16x32xbf16>
      tpu.vector_store %arg9[%c0_29, %c0_30], %50 {strides = array<i32>} : memref<16x32xbf16, #tpu.memory_space<vmem>>, vector<16x32xbf16>,
    } else {
    }
    return
  }
  func.func @transform_0(%arg0: i32, %arg1: i32) -> (i32, i32) {
    %c0_i32 = arith.constant 0 : i32
    %c0_i32_0 = arith.constant 0 : i32
    return %arg0, %c0_i32 : i32, i32
  }
  func.func @transform_1(%arg0: i32, %arg1: i32) -> (i32, i32) {
    %c0_i32 = arith.constant 0 : i32
    %c0_i32_0 = arith.constant 0 : i32
    return %c0_i32, %arg1 : i32, i32
  }
  func.func @transform_2(%arg0: i32, %arg1: i32) -> (i32, i32) {
    %c0_i32 = arith.constant 0 : i32
    %c0_i32_0 = arith.constant 0 : i32
    return %c0_i32, %arg1 : i32, i32
  }
  func.func @transform_3(%arg0: i32, %arg1: i32) -> (i32, i32) {
    %c0_i32 = arith.constant 0 : i32
    %c0_i32_0 = arith.constant 0 : i32
    return %arg1, %c0_i32 : i32, i32
  }
  func.func @transform_4(%arg0: i32, %arg1: i32) -> (i32, i32) {
    %c0_i32 = arith.constant 0 : i32
    %c0_i32_0 = arith.constant 0 : i32
    %c0_i32_1 = arith.constant 0 : i32
    return %c0_i32, %c0_i32_0 : i32, i32
  }
  func.func @transform_5(%arg0: i32, %arg1: i32) -> (i32, i32) {
    %c0_i32 = arith.constant 0 : i32
    %c0_i32_0 = arith.constant 0 : i32
    %c0_i32_1 = arith.constant 0 : i32
    return %c0_i32, %c0_i32_0 : i32, i32
  }
  func.func @transform_6(%arg0: i32, %arg1: i32) -> (i32, i32) {
    %c0_i32 = arith.constant 0 : i32
    %c0_i32_0 = arith.constant 0 : i32
    %c0_i32_1 = arith.constant 0 : i32
    return %c0_i32, %c0_i32_0 : i32, i32
  }
  func.func @transform_7(%arg0: i32, %arg1: i32) -> (i32, i32) {
    %c0_i32 = arith.constant 0 : i32
    %c0_i32_0 = arith.constant 0 : i32
    return %arg0, %c0_i32 : i32, i32
  }
}

module attributes {stable_mosaic.version = 11 : i64} {
  func.func @_linear_kernel(%arg0: i32, %arg1: i32, %arg2: i32, %arg3: memref<16x32xbf16, #tpu.memory_space<vmem>>, %arg4: memref<32x64xbf16, #tpu.memory_space<vmem>>, %arg5: memref<1x64xf32, #tpu.memory_space<vmem>>, %arg6: memref<16x64xbf16, #tpu.memory_space<vmem>>, %arg7: memref<16x64xf32, #tpu.memory_space<vmem>>) attributes {dimension_semantics = [#tpu.dimension_semantics<parallel>, #tpu.dimension_semantics<parallel>, #tpu.dimension_semantics<arbitrary>], iteration_bounds = array<i64: 1, 1, 1>, scalar_prefetch = 0 : i64, scratch_operands = 1 : i64, tpu.core_type = #tpu.core_type<tc>, window_params = [{transform_indices = @transform_0, window_bounds = array<i64: 16, 32>}, {transform_indices = @transform_1, window_bounds = array<i64: 32, 64>}, {transform_indices = @transform_2, window_bounds = array<i64: 1, 64>}, {transform_indices = @transform_3, window_bounds = array<i64: 16, 64>}]} {
    %c0_i32 = arith.constant 0 : i32
    %0 = arith.cmpi eq, %arg2, %c0_i32 : i32
    %1 = arith.extui %0 : i1 to i32
    %c0_i32_0 = arith.constant 0 : i32
    %2 = arith.cmpi ne, %1, %c0_i32_0 : i32
    scf.if %2 {
      %cst_10 = arith.constant 0.000000e+00 : f32
      %12 = vector.broadcast %cst_10 : f32 to vector<16x64xf32>
      %c0_11 = arith.constant 0 : index
      %c0_12 = arith.constant 0 : index
      %13 = vector.load %arg7[%c0_11, %c0_12] : memref<16x64xf32, #tpu.memory_space<vmem>>, vector<16x64xf32>
      tpu.vector_store %arg7[%c0_11, %c0_12], %12 {strides = array<i32>} : memref<16x64xf32, #tpu.memory_space<vmem>>, vector<16x64xf32>,
    } else {
    }
    %c0 = arith.constant 0 : index
    %c0_1 = arith.constant 0 : index
    %3 = vector.load %arg7[%c0, %c0_1] : memref<16x64xf32, #tpu.memory_space<vmem>>, vector<16x64xf32>
    %c0_2 = arith.constant 0 : index
    %c0_3 = arith.constant 0 : index
    %4 = vector.load %arg3[%c0_2, %c0_3] : memref<16x32xbf16, #tpu.memory_space<vmem>>, vector<16x32xbf16>
    %c0_4 = arith.constant 0 : index
    %c0_5 = arith.constant 0 : index
    %5 = vector.load %arg4[%c0_4, %c0_5] : memref<32x64xbf16, #tpu.memory_space<vmem>>, vector<32x64xbf16>
    %cst = arith.constant dense<0.000000e+00> : vector<16x64xf32>
    %6 = tpu.matmul %4, %5, %cst {dimension_numbers = #tpu.dot_dimension_numbers<[1], [0], [0], [1], [0, 0, 1, 1], [], []>} : vector<16x32xbf16>, vector<32x64xbf16>, vector<16x64xf32> -> vector<16x64xf32>
    %7 = arith.addf %3, %6 : vector<16x64xf32>
    %c0_6 = arith.constant 0 : index
    %c0_7 = arith.constant 0 : index
    %8 = vector.load %arg7[%c0_6, %c0_7] : memref<16x64xf32, #tpu.memory_space<vmem>>, vector<16x64xf32>
    tpu.vector_store %arg7[%c0_6, %c0_7], %7 {strides = array<i32>} : memref<16x64xf32, #tpu.memory_space<vmem>>, vector<16x64xf32>,
    %c0_i32_8 = arith.constant 0 : i32
    %9 = arith.cmpi eq, %arg2, %c0_i32_8 : i32
    %10 = arith.extui %9 : i1 to i32
    %c0_i32_9 = arith.constant 0 : i32
    %11 = arith.cmpi ne, %10, %c0_i32_9 : i32
    scf.if %11 {
      %c0_10 = arith.constant 0 : index
      %c0_11 = arith.constant 0 : index
      %12 = vector.load %arg7[%c0_10, %c0_11] : memref<16x64xf32, #tpu.memory_space<vmem>>, vector<16x64xf32>
      %c0_12 = arith.constant 0 : index
      %c0_13 = arith.constant 0 : index
      %13 = vector.load %arg5[%c0_12, %c0_13] : memref<1x64xf32, #tpu.memory_space<vmem>>, vector<1x64xf32>
      %14 = vector.broadcast %13 : vector<1x64xf32> to vector<16x64xf32>
      %15 = arith.addf %12, %14 : vector<16x64xf32>
      %16 = arith.truncf %15 : vector<16x64xf32> to vector<16x64xbf16>
      %c0_14 = arith.constant 0 : index
      %c0_15 = arith.constant 0 : index
      %17 = vector.load %arg6[%c0_14, %c0_15] : memref<16x64xbf16, #tpu.memory_space<vmem>>, vector<16x64xbf16>
      tpu.vector_store %arg6[%c0_14, %c0_15], %16 {strides = array<i32>} : memref<16x64xbf16, #tpu.memory_space<vmem>>, vector<16x64xbf16>,
    } else {
    }
    return
  }
  func.func @transform_0(%arg0: i32, %arg1: i32, %arg2: i32) -> (i32, i32) {
    %c0_i32 = arith.constant 0 : i32
    return %arg0, %arg2 : i32, i32
  }
  func.func @transform_1(%arg0: i32, %arg1: i32, %arg2: i32) -> (i32, i32) {
    %c0_i32 = arith.constant 0 : i32
    return %arg2, %arg1 : i32, i32
  }
  func.func @transform_2(%arg0: i32, %arg1: i32, %arg2: i32) -> (i32, i32) {
    %c0_i32 = arith.constant 0 : i32
    %c0_i32_0 = arith.constant 0 : i32
    return %c0_i32, %arg1 : i32, i32
  }
  func.func @transform_3(%arg0: i32, %arg1: i32, %arg2: i32) -> (i32, i32) {
    %c0_i32 = arith.constant 0 : i32
    return %arg0, %arg1 : i32, i32
  }
}

module attributes {stable_mosaic.version = 11 : i64} {
  func.func @_linear_kernel(%arg0: i32, %arg1: i32, %arg2: i32, %arg3: memref<16x32xbf16, #tpu.memory_space<vmem>>, %arg4: memref<32x13xbf16, #tpu.memory_space<vmem>>, %arg5: memref<1x13xf32, #tpu.memory_space<vmem>>, %arg6: memref<16x13xf32, #tpu.memory_space<vmem>>, %arg7: memref<16x13xf32, #tpu.memory_space<vmem>>) attributes {dimension_semantics = [#tpu.dimension_semantics<parallel>, #tpu.dimension_semantics<parallel>, #tpu.dimension_semantics<arbitrary>], iteration_bounds = array<i64: 1, 1, 1>, scalar_prefetch = 0 : i64, scratch_operands = 1 : i64, tpu.core_type = #tpu.core_type<tc>, window_params = [{transform_indices = @transform_0, window_bounds = array<i64: 16, 32>}, {transform_indices = @transform_1, window_bounds = array<i64: 32, 13>}, {transform_indices = @transform_2, window_bounds = array<i64: 1, 13>}, {transform_indices = @transform_3, window_bounds = array<i64: 16, 13>}]} {
    %c0_i32 = arith.constant 0 : i32
    %0 = arith.cmpi eq, %arg2, %c0_i32 : i32
    %1 = arith.extui %0 : i1 to i32
    %c0_i32_0 = arith.constant 0 : i32
    %2 = arith.cmpi ne, %1, %c0_i32_0 : i32
    scf.if %2 {
      %cst_10 = arith.constant 0.000000e+00 : f32
      %12 = vector.broadcast %cst_10 : f32 to vector<16x13xf32>
      %c0_11 = arith.constant 0 : index
      %c0_12 = arith.constant 0 : index
      %13 = vector.load %arg7[%c0_11, %c0_12] : memref<16x13xf32, #tpu.memory_space<vmem>>, vector<16x13xf32>
      tpu.vector_store %arg7[%c0_11, %c0_12], %12 {strides = array<i32>} : memref<16x13xf32, #tpu.memory_space<vmem>>, vector<16x13xf32>,
    } else {
    }
    %c0 = arith.constant 0 : index
    %c0_1 = arith.constant 0 : index
    %3 = vector.load %arg7[%c0, %c0_1] : memref<16x13xf32, #tpu.memory_space<vmem>>, vector<16x13xf32>
    %c0_2 = arith.constant 0 : index
    %c0_3 = arith.constant 0 : index
    %4 = vector.load %arg3[%c0_2, %c0_3] : memref<16x32xbf16, #tpu.memory_space<vmem>>, vector<16x32xbf16>
    %c0_4 = arith.constant 0 : index
    %c0_5 = arith.constant 0 : index
    %5 = vector.load %arg4[%c0_4, %c0_5] : memref<32x13xbf16, #tpu.memory_space<vmem>>, vector<32x13xbf16>
    %cst = arith.constant dense<0.000000e+00> : vector<16x13xf32>
    %6 = tpu.matmul %4, %5, %cst {dimension_numbers = #tpu.dot_dimension_numbers<[1], [0], [0], [1], [0, 0, 1, 1], [], []>} : vector<16x32xbf16>, vector<32x13xbf16>, vector<16x13xf32> -> vector<16x13xf32>
    %7 = arith.addf %3, %6 : vector<16x13xf32>
    %c0_6 = arith.constant 0 : index
    %c0_7 = arith.constant 0 : index
    %8 = vector.load %arg7[%c0_6, %c0_7] : memref<16x13xf32, #tpu.memory_space<vmem>>, vector<16x13xf32>
    tpu.vector_store %arg7[%c0_6, %c0_7], %7 {strides = array<i32>} : memref<16x13xf32, #tpu.memory_space<vmem>>, vector<16x13xf32>,
    %c0_i32_8 = arith.constant 0 : i32
    %9 = arith.cmpi eq, %arg2, %c0_i32_8 : i32
    %10 = arith.extui %9 : i1 to i32
    %c0_i32_9 = arith.constant 0 : i32
    %11 = arith.cmpi ne, %10, %c0_i32_9 : i32
    scf.if %11 {
      %c0_10 = arith.constant 0 : index
      %c0_11 = arith.constant 0 : index
      %12 = vector.load %arg7[%c0_10, %c0_11] : memref<16x13xf32, #tpu.memory_space<vmem>>, vector<16x13xf32>
      %c0_12 = arith.constant 0 : index
      %c0_13 = arith.constant 0 : index
      %13 = vector.load %arg5[%c0_12, %c0_13] : memref<1x13xf32, #tpu.memory_space<vmem>>, vector<1x13xf32>
      %14 = vector.broadcast %13 : vector<1x13xf32> to vector<16x13xf32>
      %15 = arith.addf %12, %14 : vector<16x13xf32>
      %c0_14 = arith.constant 0 : index
      %c0_15 = arith.constant 0 : index
      %16 = vector.load %arg6[%c0_14, %c0_15] : memref<16x13xf32, #tpu.memory_space<vmem>>, vector<16x13xf32>
      tpu.vector_store %arg6[%c0_14, %c0_15], %15 {strides = array<i32>} : memref<16x13xf32, #tpu.memory_space<vmem>>, vector<16x13xf32>,
    } else {
    }
    return
  }
  func.func @transform_0(%arg0: i32, %arg1: i32, %arg2: i32) -> (i32, i32) {
    %c0_i32 = arith.constant 0 : i32
    return %arg0, %arg2 : i32, i32
  }
  func.func @transform_1(%arg0: i32, %arg1: i32, %arg2: i32) -> (i32, i32) {
    %c0_i32 = arith.constant 0 : i32
    return %arg2, %arg1 : i32, i32
  }
  func.func @transform_2(%arg0: i32, %arg1: i32, %arg2: i32) -> (i32, i32) {
    %c0_i32 = arith.constant 0 : i32
    %c0_i32_0 = arith.constant 0 : i32
    return %c0_i32, %arg1 : i32, i32
  }
  func.func @transform_3(%arg0: i32, %arg1: i32, %arg2: i32) -> (i32, i32) {
    %c0_i32 = arith.constant 0 : i32
    return %arg0, %arg1 : i32, i32
  }
}

</mosaic_0001>

<bundles_post_ra>
// kernel: transformer_fwd.25
= control target key start
LH: loop header
LB: loop body
LE: loop exit
PB: predicated region body
PF: predicated region fallthrough
CT: control target
= control target key end

     0   :  { %vm19_vm0 = vcmask 785408   ;;  %v151_v0 = vmov 0.0   ;;  %vm152_vm1 = vmmov 0   ;;  %vm47_vm2 = vcmask 261120   ;;  %s195_s1 = inlined_call_operand.vmem [shape: bf16[32,96], index: 1, kind: input, shape index: {}]   ;;  %s196_s0 = inlined_call_operand.vmem [shape: bf16[16,32], index: 0, kind: input, shape index: {}]   ;;  %s197_s2 = inlined_call_operand.vmem [shape: f32[1,96], index: 2, kind: input, shape index: {}]   ;;  %s198_s3 = inlined_call_operand.vmem [shape: bf16[16,96], index: 3, kind: output, shape index: {}]  }
   0x1   :  { %138 = vmatprep.subr.bf16.mxu0 %v151_v0  ;;  %v148_v1 = vld [vmem:[%s195_s1] sm:$0xff]   ;;  %142 = vmatprep.mubr.msk.bf16.mxu0 %vm152_vm1, %v151_v0  ;;  %20 = vst.msk [vmem:[#allocation2] sm:$0xff] %vm19_vm0, %v151_v0  ;;  %21 = vst.msk [vmem:[#allocation2 + $0x8] sm:$0xff] %vm19_vm0, %v151_v0  ;;  %v149_v2 = vld [vmem:[%s195_s1 + $0x8] sm:$0xff]   ;;  %vm119_vm3 = vcmask 781312  }
   0x2   :  { %139 = vmatpush3.bf16.msra.mxu0 %v148_v1  ;;  %v150_v3 = vld [vmem:[%s196_s0] sm:$0xff]  }
   0x3   :  { %140 = vmatprep.subr.bf16.mxu0 %v151_v0  ;;  %v130_v12 = vld [vmem:[%s197_s2] ss:$0 sm:$0xff] }
   0x6   :  { %141 = vmatpush3.bf16.msra.mxu0 %v149_v2 }
   0x8   :  { %v22_v4 = vld [vmem:[#allocation2] sm:$0xff]  ;;  %v23_v6 = vld [vmem:[#allocation2 + $0x8] sm:$0xff] }
   0x9   :  { %143 = vmatmul.mubr.msk.bf16.vlgmr.msra.gmra.mrb[0].mxu0 %vm47_vm2, %v150_v3 }
  0xdc   :  { %v85_v5 = vpop.f32.mrb[0].mxu0 }
  0xdd   :  { %v92_v7 = vadd.f32 %v85_v5, %v22_v4  ;;  %v144_v8 = vpop.f32.mrb[1].mxu0 }
  0xde   :  { %v88_v9 = vpop.f32.mrb[2].mxu0 }
  0xdf   :  { %95 = vst.msk [vmem:[#allocation2] sm:$0xff] %vm19_vm0, %v92_v7  ;;  %v93_v10 = vadd.f32 %v88_v9, %v23_v6  ;;  %v145_v11 = vpop.f32.mrb[3].mxu0 }
  0xe1   :  { %96 = vst.msk [vmem:[#allocation2 + $0x8] sm:$0xff] %vm19_vm0, %v93_v10 }
  0xe6   :  { %v100_v13 = vld [vmem:[#allocation2] sm:$0xff] }
  0xe7   :  { %v109_v14 = vadd.f32 %v130_v12, %v100_v13 }
  0xe8   :  { %v101_v15 = vld [vmem:[#allocation2 + $0x8] sm:$0xff] }
  0xe9   :  { %v133_v16 = vpack.c.bf16 %v109_v14, %v109_v14  ;;  %v110_v17 = vadd.f32 %v130_v12, %v101_v15 }
  0xeb   :  { %120 = vst.msk [vmem:[%s198_s3] sm:$0xf] %vm119_vm3, %v133_v16  ;;  %v134_v18 = vpack.c.bf16 %v110_v17, %v110_v17 }
  0xed   :  { %121 = vst.msk [vmem:[%s198_s3 + $0x4] sm:$0xf] %vm119_vm3, %v134_v18 }

// kernel: transformer_fwd.28
= control target key start
LH: loop header
LB: loop body
LE: loop exit
PB: predicated region body
PF: predicated region fallthrough
CT: control target
= control target key end

     0   :  { %vm19_vm0 = vcmask 261120   ;;  %v150_v0 = vmov 0.0   ;;  %vm151_vm1 = vmmov 0   ;;  %vm118_vm2 = vcmask 257024   ;;  %s195_s1 = inlined_call_operand.vmem [shape: bf16[32,32], index: 1, kind: input, shape index: {}]   ;;  %s196_s0 = inlined_call_operand.vmem [shape: bf16[16,32], index: 0, kind: input, shape index: {}]   ;;  %s197_s2 = inlined_call_operand.vmem [shape: f32[1,32], index: 2, kind: input, shape index: {}]   ;;  %s198_s3 = inlined_call_operand.vmem [shape: bf16[16,32], index: 3, kind: output, shape index: {}]  }
   0x1   :  { %137 = vmatprep.subr.bf16.mxu0 %v150_v0  ;;  %v147_v1 = vld [vmem:[%s195_s1] sm:$0xff]   ;;  %141 = vmatprep.mubr.msk.bf16.mxu0 %vm151_vm1, %v150_v0  ;;  %20 = vst.msk [vmem:[#allocation2] sm:$0xff] %vm19_vm0, %v150_v0  ;;  %21 = vst.msk [vmem:[#allocation2 + $0x8] sm:$0xff] %vm19_vm0, %v150_v0  ;;  %v148_v2 = vld [vmem:[%s195_s1 + $0x8] sm:$0xff]  }
   0x2   :  { %138 = vmatpush3.bf16.msra.mxu0 %v147_v1  ;;  %v149_v3 = vld [vmem:[%s196_s0] sm:$0xff]  }
   0x3   :  { %139 = vmatprep.subr.bf16.mxu0 %v150_v0  ;;  %v129_v12 = vld [vmem:[%s197_s2] ss:$0 sm:$0xff] }
   0x6   :  { %140 = vmatpush3.bf16.msra.mxu0 %v148_v2 }
   0x8   :  { %v22_v4 = vld [vmem:[#allocation2] sm:$0xff]  ;;  %v23_v6 = vld [vmem:[#allocation2 + $0x8] sm:$0xff] }
   0x9   :  { %142 = vmatmul.mubr.msk.bf16.vlgmr.msra.gmra.mrb[0].mxu0 %vm19_vm0, %v149_v3 }
  0xdc   :  { %v85_v5 = vpop.f32.mrb[0].mxu0 }
  0xdd   :  { %v92_v7 = vadd.f32 %v85_v5, %v22_v4  ;;  %v143_v8 = vpop.f32.mrb[1].mxu0 }
  0xde   :  { %v88_v9 = vpop.f32.mrb[2].mxu0 }
  0xdf   :  { %94 = vst.msk [vmem:[#allocation2] sm:$0xff] %vm19_vm0, %v92_v7  ;;  %v93_v10 = vadd.f32 %v88_v9, %v23_v6  ;;  %v144_v11 = vpop.f32.mrb[3].mxu0 }
  0xe1   :  { %95 = vst.msk [vmem:[#allocation2 + $0x8] sm:$0xff] %vm19_vm0, %v93_v10 }
  0xe6   :  { %v99_v13 = vld [vmem:[#allocation2] sm:$0xff] }
  0xe7   :  { %v108_v14 = vadd.f32 %v129_v12, %v99_v13 }
  0xe8   :  { %v100_v15 = vld [vmem:[#allocation2 + $0x8] sm:$0xff] }
  0xe9   :  { %v132_v16 = vpack.c.bf16 %v108_v14, %v108_v14  ;;  %v109_v17 = vadd.f32 %v129_v12, %v100_v15 }
  0xeb   :  { %119 = vst.msk [vmem:[%s198_s3] sm:$0xf] %vm118_vm2, %v132_v16  ;;  %v133_v18 = vpack.c.bf16 %v109_v17, %v109_v17 }
  0xed   :  { %120 = vst.msk [vmem:[%s198_s3 + $0x4] sm:$0xf] %vm118_vm2, %v133_v18 }

// kernel: transformer_fwd.26
= control target key start
LH: loop header
LB: loop body
LE: loop exit
PB: predicated region body
PF: predicated region fallthrough
CT: control target
= control target key end

     0   :  { %s1388_s30 = smov 0   ;;  %s1390_s10 = smov 0   ;;  %s1526_s0 = inlined_call_operand.vmem [shape: bf16[2,4,8,8], index: 0, kind: input, shape index: {}]   ;;  %s1527_s1 = inlined_call_operand.vmem [shape: bf16[2,4,8,8], index: 1, kind: input, shape index: {}]   ;;  %s1528_s2 = inlined_call_operand.vmem [shape: bf16[2,4,8,8], index: 2, kind: input, shape index: {}]   ;;  %s1529_s3 = inlined_call_operand.vmem [shape: f32[2,1,8], index: 3, kind: input, shape index: {}]   ;;  %s1530_s4 = inlined_call_operand.vmem [shape: bf16[2,8,32], index: 4, kind: input, shape index: {}]   ;;  %s1531_s5 = inlined_call_operand.vmem [shape: bf16[32,32], index: 5, kind: input, shape index: {}]   ;;  %s1532_s6 = inlined_call_operand.vmem [shape: f32[1,32], index: 6, kind: input, shape index: {}]   ;;  %s1533_s7 = inlined_call_operand.vmem [shape: f32[1,32], index: 7, kind: input, shape index: {}]   ;;  %s1534_s8 = inlined_call_operand.vmem [shape: f32[1,32], index: 8, kind: input, shape index: {}]   ;;  %s1535_s9 = inlined_call_operand.vmem [shape: bf16[2,8,32], index: 9, kind: output, shape index: {}]  }
   0x1   :  { %s1392_s11 = smov 0  }
   0x2 LB: > { %s31_s12 = sadd.s32 1, %s1326_s10  ;;  %p1155_p0 = scmp.ge.s32.totalorder %s1330_s11, 1  ;;  %s1330_s11 = sphi %s1392_s11, %s19_s11   ;;  %s1326_s10 = sphi %s1390_s10, %s1539_s10   ;;  %s1322_s30 = sphi %s1388_s30, %s1538_s30  }
   0x3   : > { %p33_p1 = scmp.ge.s32.totalorder %s31_s12, 2  ;;  %p348_p2 = scmp.lt.s32.totalorder %s1330_s11, 3 }
   0x5   : > { %s1541_s12 = smov (%p33_p1, %s31_s12), 0  ;;  %p349_p3 = pnand %p1155_p0, %p348_p2 }
   0x6   : > { %p409_p4 = scmp.lt.s32.totalorder (!%p349_p3), %s1322_s30, 1  ;;  %v1332_v0 = vmov (!%p349_p3), 0.0   ;;  %vm1333_vm0 = vmmov (!%p349_p3), 0   ;;  %vm474_vm1 = vcmask (!%p349_p3), 64512   ;;  %v460_v13 = vlaneseq (!%p349_p3)  ;;  %s1336_s14 = smov (!%p349_p3), 16  }
   0x7   : > { %352 = sbr.rel (%p349_p3) target bundleno = 1438 (0x59e), region = 56  ;;  %1202 = vmatprep.subr.bf16.mxu0 (!%p349_p3), %v1332_v0  ;;  %1208 = vmatprep.subr.bf16.mxu1 (!%p349_p3), %v1332_v0  ;;  %v1334_v17 = vmov (!%p349_p3), 0   ;;  %vm720_vm6 = vcmask (!%p349_p3), 1043456   ;;  %s1337_s15 = smov (!%p349_p3), 24   ;;  %vm907_vm7 = vcmask (!%p349_p3), 130112   ;;  %vm913_vm8 = vcmask (!%p349_p3), 195712  }
   0x8   : > { %1204 = vmatprep.mubr.msk.bf16.mxu0 (!%p349_p3), %vm1333_vm0, %v1332_v0  ;;  %1210 = vmatprep.mubr.msk.bf16.mxu1 (!%p349_p3), %vm1333_vm0, %v1332_v0  ;;  %v461_v15 = vshrl.u32 (!%p349_p3), %v460_v13, 7  ;;  %v465_v19 = vand.u32 (!%p349_p3), 127, %v460_v13  ;;  %vm919_vm9 = vcmask (!%p349_p3), 261312   ;;  %vm946_vm10 = vcmask (!%p349_p3), 261120  }
   0x9   : > { %vm1024_vm11 = vcmask (!%p349_p3), 257024  }
   0xa   : > { %v470_v16 = vsub.s32 (!%p349_p3), 0, %v461_v15  ;;  %vm466_vm3 = vcmp.le.s32.totalorder (!%p349_p3), %v465_v19, %v461_v15 }
   0xe   : > { %s1543_s30 = smov (!%p409_p4, %s1322_s30), 1 }
   0xf   : > { %s1415_s13 = sshll.u32 %s1543_s30, 4  ;;  %s429_s22 = scalar_lea.vmem %s1529_s3, %s1543_s30 }
  0x10   : > { %s421_s16 = scalar_lea.vmem %s1527_s1, %s1415_s13  ;;  %s416_s19 = scalar_lea.vmem %s1526_s0, %s1415_s13  ;;  %v457_v14 = vld [vmem:[%s429_s22] sm:$0x1] }
  0x11   : > { %v449_v1 = vld [vmem:[%s421_s16] sm:$0xf]  ;;  %v450_v2 = vld [vmem:[%s421_s16 + $0x4] sm:$0xf]  ;;  %v451_v5 = vld [vmem:[%s421_s16 + $0x8] sm:$0xf]  ;;  %s426_s25 = scalar_lea.vmem %s1528_s2, %s1415_s13 }
  0x12   : > { %v479_v3 = vsel %vm474_vm1, %v449_v1, 0  ;;  %v525_v4 = vsel %vm474_vm1, %v450_v2, 0  ;;  %v452_v6 = vld [vmem:[%s421_s16 + $0xc] sm:$0xf]  ;;  %v445_v7 = vld [vmem:[%s416_s19] sm:$0xf] }
  0x13   : > { %1203 = vmatpush3.bf16.xpose.msra.mxu0 %v479_v3  ;;  %1209 = vmatpush3.bf16.xpose.msra.mxu1 %v525_v4  ;;  %v446_v8 = vld [vmem:[%s416_s19 + $0x4] sm:$0xf]  ;;  %v571_v9 = vsel %vm474_vm1, %v451_v5, 0  ;;  %v617_v10 = vsel %vm474_vm1, %v452_v6, 0  ;;  %v447_v11 = vld [vmem:[%s416_s19 + $0x8] sm:$0xf] }
  0x14   : > { %1214 = vmatprep.subr.bf16.mxu0 %v1332_v0  ;;  %1220 = vmatprep.subr.bf16.mxu1 %v1332_v0  ;;  %v448_v12 = vld [vmem:[%s416_s19 + $0xc] sm:$0xf]  ;;  %vm458_vm2 = vcmp.ne.f32.partialorder %v457_v14, 0.0  ;;  %s1335_s13 = smov 8   ;;  %s1162_s16 = sshll.u32 %s1543_s30, 2 }
  0x15   : > { %v467_v18 = vsel %vm458_vm2, 1, %v1334_v17  ;;  %v456_v13 = vld [vmem:[%s426_s25 + $0xc] sm:$0xf]  ;;  %s436_s19 = scalar_lea.vmem %s1530_s4, %s1162_s16  ;;  %s443_s28 = scalar_lea.vmem %s1535_s9, %s1162_s16 }
  0x16   : > { %v471_v20 = vrot.slane %v467_v18, %v470_v16  ;;  %v860_v14 = vsel %vm720_vm6, %v456_v13, 0 }
  0x18   : > { %vm472_vm4 = vcmp.eq.s32.totalorder %v471_v20, 1 }
  0x19   : > { %vm1449_vm5 = vmand %vm472_vm4, %vm466_vm3 }
  0x1a   : > { %1205 = vmatmul.mubr.msk.bf16.vlgmr.msra.gmra.mrb[0].mxu0 %vm474_vm1, %v445_v7  ;;  %1211 = vmatmul.mubr.msk.bf16.vlgmr.msra.gmra.mrb[0].mxu1 %vm474_vm1, %v446_v8  ;;  %v453_v7 = vld [vmem:[%s426_s25] sm:$0xf] }
  0x1b   : > { %1215 = vmatpush3.bf16.xpose.msra.mxu0 %v571_v9  ;;  %1221 = vmatpush3.bf16.xpose.msra.mxu1 %v617_v10  ;;  %v722_v8 = vsel %vm720_vm6, %v453_v7, 0  ;;  %v454_v9 = vld [vmem:[%s426_s25 + $0x4] sm:$0xf] }
  0x1c   : > { %1216 = vmatprep.mubr.msk.bf16.mxu0 %vm1333_vm0, %v1332_v0  ;;  %1222 = vmatprep.mubr.msk.bf16.mxu1 %vm1333_vm0, %v1332_v0  ;;  %v768_v10 = vsel %vm720_vm6, %v454_v9, 0  ;;  %v1176_v9 = vld [vmem:[%s1533_s7] ss:$0 sm:$0xff] }
  0x1d   : > { %1226 = vmatprep.subr.bf16.mxu0 %v1332_v0  ;;  %1232 = vmatprep.subr.bf16.mxu1 %v1332_v0 }
  0x22   : > { %1217 = vmatmul.mubr.msk.bf16.vlgmr.msra.gmra.mrb[4].mxu0 %vm474_vm1, %v447_v11  ;;  %1223 = vmatmul.mubr.msk.bf16.vlgmr.msra.gmra.mrb[4].mxu1 %vm474_vm1, %v448_v12  ;;  %v455_v11 = vld [vmem:[%s426_s25 + $0x8] sm:$0xf] }
  0x23   : > { %1228 = vmatprep.mubr.msk.bf16.mxu0 %vm1333_vm0, %v1332_v0  ;;  %1234 = vmatprep.mubr.msk.bf16.mxu1 %vm1333_vm0, %v1332_v0  ;;  %v814_v12 = vsel %vm720_vm6, %v455_v11, 0  ;;  %v1177_v11 = vld [vmem:[%s1534_s8] ss:$0 sm:$0xff] }
  0x24   : > { %1227 = vmatpush3.bf16.msra.mxu0 %v722_v8  ;;  %1233 = vmatpush3.bf16.msra.mxu1 %v768_v10 }
  0x25   : > { %1238 = vmatprep.subr.bf16.mxu0 %v1332_v0  ;;  %1244 = vmatprep.subr.bf16.mxu1 %v1332_v0 }
  0xed   : > { %v515_v22 = vpop.f32.mrb[0].mxu0  ;;  %v561_v23 = vpop.f32.mrb[0].mxu1 }
  0xee   : > { %v661_v24 = vsel %vm1449_vm5, %v515_v22, -1e+20  ;;  %v1206_v25 = vpop.f32.mrb[1].mxu0  ;;  %v662_v26 = vsel %vm1449_vm5, %v561_v23, -1e+20  ;;  %v1212_v27 = vpop.f32.mrb[1].mxu1 }
  0xef   : > { %v665_v28 = vmul.f32 0.17677669, %v661_v24  ;;  %v518_v29 = vpop.f32.mrb[2].mxu0  ;;  %v666_v30 = vmul.f32 0.17677669, %v662_v26  ;;  %v564_v31 = vpop.f32.mrb[2].mxu1 }
  0xf0   : > { %v1207_v32 = vpop.f32.mrb[3].mxu0  ;;  %v1213_v33 = vpop.f32.mrb[3].mxu1 }
  0xf1   : > { %v669_v34 = vsel %vm474_vm1, %v665_v28, -inf  ;;  %v672_v35 = vsel %vm474_vm1, %v666_v30, -inf  ;;  %v1288_v32 = vld [vmem:[%s1531_s5] sm:$0xff]  }
  0xf2   : > { %670 = vmax.xlane.f32.xlu0 %v669_v34 }
  0xf5   : > { %v607_v36 = vpop.f32.mrb[4].mxu0  ;;  %v653_v37 = vpop.f32.mrb[4].mxu1 }
  0xf6   : > { %v663_v38 = vsel %vm1449_vm5, %v607_v36, -1e+20  ;;  %673 = vmax.xlane.f32.xlu0 %v672_v35  ;;  %v1218_v39 = vpop.f32.mrb[5].mxu0  ;;  %v664_v40 = vsel %vm1449_vm5, %v653_v37, -1e+20  ;;  %v1224_v41 = vpop.f32.mrb[5].mxu1 }
  0xf7   : > { %v667_v42 = vmul.f32 0.17677669, %v663_v38  ;;  %v610_v43 = vpop.f32.mrb[6].mxu0  ;;  %v668_v44 = vmul.f32 0.17677669, %v664_v40  ;;  %v656_v45 = vpop.f32.mrb[6].mxu1 }
  0xf8   : > { %v1219_v46 = vpop.f32.mrb[7].mxu0  ;;  %v1225_v47 = vpop.f32.mrb[7].mxu1  ;;  %v1289_v35 = vld [vmem:[%s1531_s5 + $0x8] sm:$0xff]  }
  0xf9   : > { %v675_v48 = vsel %vm474_vm1, %v667_v42, -inf  ;;  %v678_v49 = vsel %vm474_vm1, %v668_v44, -inf }
  0xfa   : > { %676 = vmax.xlane.f32.xlu1 %v675_v48 }
  0xfe   : > { %679 = vmax.xlane.f32.xlu1 %v678_v49 }
 0x17f   : > { %v671_v50 = vpop.xlane.xlu0 %670 }
 0x180   : > { %v681_v51 = vsub.f32 %v665_v28, %v671_v50 }
 0x182   : > { %v685_v52 = vmul.f32 1.442695, %v681_v51 }
 0x183   : > { %v674_v53 = vpop.xlane.xlu0 %673 }
 0x184   : > { %1290 = vpow2.f32 %v685_v52  ;;  %v682_v54 = vsub.f32 %v666_v30, %v674_v53  ;;  %v990_v53 = vld [vmem:[%s436_s19] sm:$0xf] }
 0x186   : > { %v687_v55 = vmul.f32 1.442695, %v682_v54  ;;  %v1172_v54 = vld [vmem:[%s1532_s6] ss:$0 sm:$0xff] }
 0x187   : > { %v677_v56 = vpop.xlane.xlu1 %676 }
 0x188   : > { %1292 = vpow2.f32 %v687_v55  ;;  %v683_v57 = vsub.f32 %v667_v42, %v677_v56  ;;  %v991_v55 = vunpack.c.l.bf16 %v990_v53 }
 0x18a   : > { %v689_v58 = vmul.f32 1.442695, %v683_v57 }
 0x18b   : > { %v680_v59 = vpop.xlane.xlu1 %679 }
 0x18c   : > { %1294 = vpow2.f32 %v689_v58  ;;  %v684_v60 = vsub.f32 %v668_v44, %v680_v59 }
 0x18e   : > { %v1291_v61 = vpop.eup %1290  ;;  %v691_v62 = vmul.f32 1.442695, %v684_v60 }
 0x18f   : > { %v693_v63 = vsel %vm474_vm1, %v1291_v61, 0.0 }
 0x190   : > { %1296 = vpow2.f32 %v691_v62  ;;  %694 = vadd.xlane.f32.xlu0 %v693_v63 }
 0x192   : > { %v1293_v1 = vpop.eup %1292 }
 0x193   : > { %v696_v2 = vsel %vm474_vm1, %v1293_v1, 0.0 }
 0x194   : > { %697 = vadd.xlane.f32.xlu1 %v696_v2 }
 0x196   : > { %v1295_v3 = vpop.eup %1294 }
 0x197   : > { %v699_v4 = vsel %vm474_vm1, %v1295_v3, 0.0 }
 0x198   : > { %700 = vadd.xlane.f32.xlu0 %v699_v4 }
 0x19a   : > { %v1297_v5 = vpop.eup %1296 }
 0x19b   : > { %v702_v6 = vsel %vm474_vm1, %v1297_v5, 0.0 }
 0x19c   : > { %703 = vadd.xlane.f32.xlu1 %v702_v6 }
 0x21d   : > { %v695_v15 = vpop.xlane.xlu0 %694 }
 0x21e   : > { %1298 = vrcp.f32 %v695_v15 }
 0x221   : > { %v698_v16 = vpop.xlane.xlu1 %697 }
 0x222   : > { %1300 = vrcp.f32 %v698_v16 }
 0x225   : > { %v701_v17 = vpop.xlane.xlu0 %700 }
 0x226   : > { %1302 = vrcp.f32 %v701_v17 }
 0x228   : > { %v1299_v18 = vpop.eup %1298 }
 0x229   : > { %v709_v19 = vmul.f32 %v1299_v18, %v1291_v61  ;;  %v704_v20 = vpop.xlane.xlu1 %703 }
 0x22a   : > { %1304 = vrcp.f32 %v704_v20 }
 0x22b   : > { %v713_v21 = vpack.c.bf16 %v709_v19, %v709_v19 }
 0x22c   : > { %v1301_v22 = vpop.eup %1300 }
 0x22d   : > { %v710_v23 = vmul.f32 %v1301_v22, %v1293_v1  ;;  %1229 = vmatmul.mubr.msk.bf16.vlgmr.msra.gmra.mrb[8].mxu0 %vm474_vm1, %v713_v21 }
 0x22e   : > { %1239 = vmatpush3.bf16.msra.mxu0 %v814_v12  ;;  %1240 = vmatprep.mubr.msk.bf16.mxu0 %vm1333_vm0, %v1332_v0 }
 0x22f   : > { %v714_v24 = vpack.c.bf16 %v710_v23, %v710_v23  ;;  %1250 = vmatprep.subr.bf16.mxu0 %v1332_v0 }
 0x230   : > { %v1303_v25 = vpop.eup %1302 }
 0x231   : > { %v711_v26 = vmul.f32 %v1303_v25, %v1295_v3  ;;  %1235 = vmatmul.mubr.msk.bf16.vlgmr.msra.gmra.mrb[8].mxu1 %vm474_vm1, %v714_v24 }
 0x232   : > { %1245 = vmatpush3.bf16.msra.mxu1 %v860_v14  ;;  %1246 = vmatprep.mubr.msk.bf16.mxu1 %vm1333_vm0, %v1332_v0 }
 0x233   : > { %v715_v27 = vpack.c.bf16 %v711_v26, %v711_v26 }
 0x234   : > { %v1305_v28 = vpop.eup %1304 }
 0x235   : > { %v712_v29 = vmul.f32 %v1305_v28, %v1297_v5  ;;  %1241 = vmatmul.mubr.msk.bf16.vlgmr.msra.gmra.mrb[12].mxu0 %vm474_vm1, %v715_v27 }
 0x236   : > { %1254 = vmatprep.mubr.msk.bf16.mxu0 %vm1333_vm0, %v1332_v0  ;;  %1251 = vmatpush3.bf16.msra.mxu0 %v1288_v32 }
 0x237   : > { %v716_v30 = vpack.c.bf16 %v712_v29, %v712_v29  ;;  %1252 = vmatprep.subr.bf16.mxu0 %v1332_v0 }
 0x239   : > { %1247 = vmatmul.mubr.msk.bf16.vlgmr.msra.gmra.mrb[12].mxu1 %vm474_vm1, %v716_v30 }
 0x23a   : > { %1253 = vmatpush3.bf16.msra.mxu0 %v1289_v35 }
 0x300   : > { %v758_v31 = vpop.f32.mrb[8].mxu0 }
 0x301   : > { %902 = vst.msk [vmem:[#allocation2] sm:$0xff] %vm474_vm1, %v758_v31  ;;  %v1230_v33 = vpop.f32.mrb[9].mxu0 }
 0x302   : > { %v761_v34 = vpop.f32.mrb[10].mxu0 }
 0x303   : > { %v1231_v36 = vpop.f32.mrb[11].mxu0 }
 0x304   : > { %v804_v37 = vpop.f32.mrb[8].mxu1 }
 0x305   : > { %904 = vrot.lane.b32.xlu0 %v804_v37, %s1335_s13  ;;  %v1236_v38 = vpop.f32.mrb[9].mxu1 }
 0x306   : > { %v807_v39 = vpop.f32.mrb[10].mxu1 }
 0x307   : > { %v1237_v40 = vpop.f32.mrb[11].mxu1 }
 0x308   : > { %v850_v41 = vpop.f32.mrb[12].mxu0 }
 0x309   : > { %910 = vrot.lane.b32.xlu1 %v850_v41, %s1336_s14  ;;  %v1242_v42 = vpop.f32.mrb[13].mxu0 }
 0x30a   : > { %v853_v43 = vpop.f32.mrb[14].mxu0 }
 0x30b   : > { %v1243_v44 = vpop.f32.mrb[15].mxu0 }
 0x30c   : > { %v896_v45 = vpop.f32.mrb[12].mxu1 }
 0x30d   : > { %v1248_v46 = vpop.f32.mrb[13].mxu1  ;;  %916 = vrot.lane.b32.xlu1 %v896_v45, %s1337_s15 }
 0x30e   : > { %v899_v47 = vpop.f32.mrb[14].mxu1 }
 0x30f   : > { %v1249_v0 = vpop.f32.mrb[15].mxu1 }
 0x377   : > { %v905_v48 = vpop.permute.xlu0 %904 }
 0x378   : > { %908 = vst.msk [vmem:[#allocation2] sm:$0xff] %vm907_vm7, %v905_v48 }
 0x37b   : > { %v911_v49 = vpop.permute.xlu1 %910 }
 0x37c   : > { %914 = vst.msk [vmem:[#allocation2] sm:$0xff] %vm913_vm8, %v911_v49 }
 0x37f   : > { %v917_v50 = vpop.permute.xlu1 %916 }
 0x380   : > { %920 = vst.msk [vmem:[#allocation2] sm:$0xff] %vm919_vm9, %v917_v50 }
 0x387   : > { %v921_v51 = vld [vmem:[#allocation2] sm:$0xff] }
 0x388   : > { %v922_v52 = vpack.c.bf16 %v921_v51, %v921_v51 }
 0x38a   : > { %1255 = vmatmul.mubr.msk.bf16.vlgmr.msra.gmra.mrb[16].mxu0 %vm946_vm10, %v922_v52 }
 0x45d   : > { %v984_v56 = vpop.f32.mrb[16].mxu0 }
 0x45e   : > { %v985_v57 = vadd.f32 %v1172_v54, %v984_v56  ;;  %v1256_v58 = vpop.f32.mrb[17].mxu0 }
 0x45f   : > { %v987_v59 = vpop.f32.mrb[18].mxu0 }
 0x460   : > { %v1257_v60 = vpop.f32.mrb[19].mxu0  ;;  %v992_v61 = vadd.f32 %v991_v55, %v985_v57 }
 0x462   : > { %v993_v62 = vsel %vm946_vm10, %v992_v61, 0.0 }
 0x463   : > { %994 = vadd.xlane.f32.xlu1 %v993_v62 }
 0x4f0   : > { %v995_v63 = vpop.xlane.xlu1 %994 }
 0x4f1   : > { %v997_v1 = vmul.f32 0.03125, %v995_v63 }
 0x4f3   : > { %v998_v2 = vsub.f32 %v992_v61, %v997_v1 }
 0x4f5   : > { %v999_v3 = vmul.f32 %v998_v2, %v998_v2 }
 0x4f7   : > { %v1000_v4 = vsel %vm946_vm10, %v999_v3, 0.0 }
 0x4f8   : > { %1001 = vadd.xlane.f32.xlu0 %v1000_v4 }
 0x585   : > { %v1002_v5 = vpop.xlane.xlu0 %1001 }
 0x586   : > { %v1003_v6 = vmul.f32 0.03125, %v1002_v5 }
 0x588   : > { %v1004_v7 = vadd.f32 1e-05, %v1003_v6 }
 0x58a   : > { %1306 = vrsqrt.f32 %v1004_v7 }
 0x594   : > { %v1307_v8 = vpop.eup %1306 }
 0x595   : > { %v1006_v10 = vmul.f32 %v1307_v8, %v998_v2 }
 0x597   : > { %v1014_v12 = vmul.f32 %v1176_v9, %v1006_v10 }
 0x599   : > { %v1022_v13 = vadd.f32 %v1177_v11, %v1014_v12 }
 0x59b   : > { %v1023_v14 = vpack.c.bf16 %v1022_v13, %v1022_v13 }
 0x59d   : > { %1025 = vst.msk [vmem:[%s443_s28] sm:$0xf] %vm1024_vm11, %v1023_v14 }
 0x59e PF: > { %s19_s11 = sadd.s32 1, %s1330_s11   ;;  %s1538_s30 = smov %s1326_s10 }
 0x59f   : > { %p16_p5 = scmp.ge.s32.totalorder %s19_s11, 4   ;;  %s1539_s10 = smov %s1541_s12 }
 0x5a1   :  { %18 = sbr.rel (!%p16_p5) target bundleno = 2 (0x2), region = 98 }

// kernel: transformer_fwd.20
= control target key start
LH: loop header
LB: loop body
LE: loop exit
PB: predicated region body
PF: predicated region fallthrough
CT: control target
= control target key end

     0   :  { %s1377_s30 = smov 0   ;;  %s1379_s10 = smov 0   ;;  %s1507_s0 = inlined_call_operand.vmem [shape: bf16[2,4,8,8], index: 0, kind: input, shape index: {}]   ;;  %s1508_s1 = inlined_call_operand.vmem [shape: bf16[2,4,8,8], index: 1, kind: input, shape index: {}]   ;;  %s1509_s2 = inlined_call_operand.vmem [shape: bf16[2,4,8,8], index: 2, kind: input, shape index: {}]   ;;  %s1510_s3 = inlined_call_operand.vmem [shape: f32[2,1,8], index: 3, kind: input, shape index: {}]   ;;  %s1511_s4 = inlined_call_operand.vmem [shape: bf16[2,8,32], index: 4, kind: input, shape index: {}]   ;;  %s1512_s5 = inlined_call_operand.vmem [shape: bf16[32,32], index: 5, kind: input, shape index: {}]   ;;  %s1513_s6 = inlined_call_operand.vmem [shape: f32[1,32], index: 6, kind: input, shape index: {}]   ;;  %s1514_s7 = inlined_call_operand.vmem [shape: f32[1,32], index: 7, kind: input, shape index: {}]   ;;  %s1515_s8 = inlined_call_operand.vmem [shape: f32[1,32], index: 8, kind: input, shape index: {}]   ;;  %s1516_s9 = inlined_call_operand.vmem [shape: bf16[2,8,32], index: 9, kind: output, shape index: {}]  }
   0x1   :  { %s1381_s11 = smov 0  }
   0x2 LB: > { %s31_s12 = sadd.s32 1, %s1315_s10  ;;  %p1144_p0 = scmp.ge.s32.totalorder %s1319_s11, 1  ;;  %s1319_s11 = sphi %s1381_s11, %s19_s11   ;;  %s1315_s10 = sphi %s1379_s10, %s1518_s10   ;;  %s1311_s30 = sphi %s1377_s30, %s1517_s30  }
   0x3   : > { %p33_p1 = scmp.ge.s32.totalorder %s31_s12, 2  ;;  %p348_p2 = scmp.lt.s32.totalorder %s1319_s11, 3 }
   0x5   : > { %s1520_s12 = smov (%p33_p1, %s31_s12), 0  ;;  %p349_p3 = pnand %p1144_p0, %p348_p2 }
   0x6   : > { %p409_p4 = scmp.lt.s32.totalorder (!%p349_p3), %s1311_s30, 1  ;;  %v1321_v0 = vmov (!%p349_p3), 0.0   ;;  %vm1322_vm0 = vmmov (!%p349_p3), 0   ;;  %vm459_vm1 = vcmask (!%p349_p3), 64512   ;;  %v645_v13 = vlaneseq (!%p349_p3)  ;;  %s1325_s14 = smov (!%p349_p3), 16  }
   0x7   : > { %352 = sbr.rel (%p349_p3) target bundleno = 1438 (0x59e), region = 56  ;;  %1191 = vmatprep.subr.bf16.mxu0 (!%p349_p3), %v1321_v0  ;;  %1197 = vmatprep.subr.bf16.mxu1 (!%p349_p3), %v1321_v0  ;;  %v1323_v17 = vmov (!%p349_p3), 0   ;;  %vm709_vm4 = vcmask (!%p349_p3), 1043456   ;;  %s1326_s15 = smov (!%p349_p3), 24   ;;  %vm896_vm5 = vcmask (!%p349_p3), 130112   ;;  %vm902_vm6 = vcmask (!%p349_p3), 195712  }
   0x8   : > { %1193 = vmatprep.mubr.msk.bf16.mxu0 (!%p349_p3), %vm1322_vm0, %v1321_v0  ;;  %1199 = vmatprep.mubr.msk.bf16.mxu1 (!%p349_p3), %vm1322_vm0, %v1321_v0  ;;  %v646_v15 = vshrl.u32 (!%p349_p3), %v645_v13, 7  ;;  %vm908_vm7 = vcmask (!%p349_p3), 261312   ;;  %vm935_vm8 = vcmask (!%p349_p3), 261120   ;;  %vm1013_vm9 = vcmask (!%p349_p3), 257024  }
   0xa   : > { %v647_v16 = vsub.s32 (!%p349_p3), 0, %v646_v15 }
   0xe   : > { %s1522_s30 = smov (!%p409_p4, %s1311_s30), 1 }
   0xf   : > { %s1404_s13 = sshll.u32 %s1522_s30, 4  ;;  %s429_s22 = scalar_lea.vmem %s1510_s3, %s1522_s30 }
  0x10   : > { %s421_s16 = scalar_lea.vmem %s1508_s1, %s1404_s13  ;;  %s416_s19 = scalar_lea.vmem %s1507_s0, %s1404_s13  ;;  %v457_v14 = vld [vmem:[%s429_s22] sm:$0x1] }
  0x11   : > { %v449_v1 = vld [vmem:[%s421_s16] sm:$0xf]  ;;  %v450_v2 = vld [vmem:[%s421_s16 + $0x4] sm:$0xf]  ;;  %v451_v5 = vld [vmem:[%s421_s16 + $0x8] sm:$0xf]  ;;  %s426_s25 = scalar_lea.vmem %s1509_s2, %s1404_s13 }
  0x12   : > { %v464_v3 = vsel %vm459_vm1, %v449_v1, 0  ;;  %v510_v4 = vsel %vm459_vm1, %v450_v2, 0  ;;  %v452_v6 = vld [vmem:[%s421_s16 + $0xc] sm:$0xf]  ;;  %v445_v7 = vld [vmem:[%s416_s19] sm:$0xf] }
  0x13   : > { %1192 = vmatpush3.bf16.xpose.msra.mxu0 %v464_v3  ;;  %1198 = vmatpush3.bf16.xpose.msra.mxu1 %v510_v4  ;;  %v446_v8 = vld [vmem:[%s416_s19 + $0x4] sm:$0xf]  ;;  %v556_v9 = vsel %vm459_vm1, %v451_v5, 0  ;;  %v602_v10 = vsel %vm459_vm1, %v452_v6, 0  ;;  %v447_v11 = vld [vmem:[%s416_s19 + $0x8] sm:$0xf] }
  0x14   : > { %1203 = vmatprep.subr.bf16.mxu0 %v1321_v0  ;;  %1209 = vmatprep.subr.bf16.mxu1 %v1321_v0  ;;  %v448_v12 = vld [vmem:[%s416_s19 + $0xc] sm:$0xf]  ;;  %vm458_vm2 = vcmp.ne.f32.partialorder %v457_v14, 0.0  ;;  %v453_v5 = vld [vmem:[%s426_s25] sm:$0xf]  ;;  %s1324_s13 = smov 8  }
  0x15   : > { %v644_v18 = vsel %vm458_vm2, 1, %v1323_v17  ;;  %v711_v6 = vsel %vm709_vm4, %v453_v5, 0  ;;  %s1151_s16 = sshll.u32 %s1522_s30, 2 }
  0x16   : > { %v648_v19 = vrot.slane %v644_v18, %v647_v16  ;;  %s436_s19 = scalar_lea.vmem %s1511_s4, %s1151_s16  ;;  %s443_s28 = scalar_lea.vmem %s1516_s9, %s1151_s16 }
  0x18   : > { %vm649_vm3 = vcmp.eq.s32.totalorder %v648_v19, 1 }
  0x1a   : > { %1194 = vmatmul.mubr.msk.bf16.vlgmr.msra.gmra.mrb[0].mxu0 %vm459_vm1, %v445_v7  ;;  %1200 = vmatmul.mubr.msk.bf16.vlgmr.msra.gmra.mrb[0].mxu1 %vm459_vm1, %v446_v8  ;;  %v454_v7 = vld [vmem:[%s426_s25 + $0x4] sm:$0xf] }
  0x1b   : > { %1204 = vmatpush3.bf16.xpose.msra.mxu0 %v556_v9  ;;  %1210 = vmatpush3.bf16.xpose.msra.mxu1 %v602_v10  ;;  %v757_v8 = vsel %vm709_vm4, %v454_v7, 0  ;;  %v455_v9 = vld [vmem:[%s426_s25 + $0x8] sm:$0xf]  ;;  %v1165_v7 = vld [vmem:[%s1514_s7] ss:$0 sm:$0xff] }
  0x1c   : > { %1205 = vmatprep.mubr.msk.bf16.mxu0 %vm1322_vm0, %v1321_v0  ;;  %1211 = vmatprep.mubr.msk.bf16.mxu1 %vm1322_vm0, %v1321_v0  ;;  %v803_v10 = vsel %vm709_vm4, %v455_v9, 0  ;;  %v1166_v9 = vld [vmem:[%s1515_s8] ss:$0 sm:$0xff] }
  0x1d   : > { %1215 = vmatprep.subr.bf16.mxu0 %v1321_v0  ;;  %1221 = vmatprep.subr.bf16.mxu1 %v1321_v0 }
  0x22   : > { %1206 = vmatmul.mubr.msk.bf16.vlgmr.msra.gmra.mrb[4].mxu0 %vm459_vm1, %v447_v11  ;;  %1212 = vmatmul.mubr.msk.bf16.vlgmr.msra.gmra.mrb[4].mxu1 %vm459_vm1, %v448_v12  ;;  %v456_v11 = vld [vmem:[%s426_s25 + $0xc] sm:$0xf] }
  0x23   : > { %1217 = vmatprep.mubr.msk.bf16.mxu0 %vm1322_vm0, %v1321_v0  ;;  %1223 = vmatprep.mubr.msk.bf16.mxu1 %vm1322_vm0, %v1321_v0  ;;  %v849_v12 = vsel %vm709_vm4, %v456_v11, 0 }
  0x24   : > { %1216 = vmatpush3.bf16.msra.mxu0 %v711_v6  ;;  %1222 = vmatpush3.bf16.msra.mxu1 %v757_v8 }
  0x25   : > { %1227 = vmatprep.subr.bf16.mxu0 %v1321_v0  ;;  %1233 = vmatprep.subr.bf16.mxu1 %v1321_v0 }
  0xed   : > { %v500_v20 = vpop.f32.mrb[0].mxu0  ;;  %v546_v21 = vpop.f32.mrb[0].mxu1 }
  0xee   : > { %v650_v22 = vsel %vm649_vm3, %v500_v20, -1e+20  ;;  %v1195_v23 = vpop.f32.mrb[1].mxu0  ;;  %v651_v24 = vsel %vm649_vm3, %v546_v21, -1e+20  ;;  %v1201_v25 = vpop.f32.mrb[1].mxu1 }
  0xef   : > { %v654_v26 = vmul.f32 0.17677669, %v650_v22  ;;  %v503_v27 = vpop.f32.mrb[2].mxu0  ;;  %v655_v28 = vmul.f32 0.17677669, %v651_v24  ;;  %v549_v29 = vpop.f32.mrb[2].mxu1 }
  0xf0   : > { %v1196_v30 = vpop.f32.mrb[3].mxu0  ;;  %v1202_v31 = vpop.f32.mrb[3].mxu1 }
  0xf1   : > { %v658_v32 = vsel %vm459_vm1, %v654_v26, -inf  ;;  %v661_v33 = vsel %vm459_vm1, %v655_v28, -inf  ;;  %v1277_v30 = vld [vmem:[%s1512_s5] sm:$0xff]  }
  0xf2   : > { %659 = vmax.xlane.f32.xlu0 %v658_v32 }
  0xf5   : > { %v592_v34 = vpop.f32.mrb[4].mxu0  ;;  %v638_v35 = vpop.f32.mrb[4].mxu1 }
  0xf6   : > { %v652_v36 = vsel %vm649_vm3, %v592_v34, -1e+20  ;;  %662 = vmax.xlane.f32.xlu0 %v661_v33  ;;  %v1207_v37 = vpop.f32.mrb[5].mxu0  ;;  %v653_v38 = vsel %vm649_vm3, %v638_v35, -1e+20  ;;  %v1213_v39 = vpop.f32.mrb[5].mxu1 }
  0xf7   : > { %v656_v40 = vmul.f32 0.17677669, %v652_v36  ;;  %v595_v41 = vpop.f32.mrb[6].mxu0  ;;  %v657_v42 = vmul.f32 0.17677669, %v653_v38  ;;  %v641_v43 = vpop.f32.mrb[6].mxu1 }
  0xf8   : > { %v1208_v44 = vpop.f32.mrb[7].mxu0  ;;  %v1214_v45 = vpop.f32.mrb[7].mxu1  ;;  %v1278_v33 = vld [vmem:[%s1512_s5 + $0x8] sm:$0xff]  }
  0xf9   : > { %v664_v46 = vsel %vm459_vm1, %v656_v40, -inf  ;;  %v667_v47 = vsel %vm459_vm1, %v657_v42, -inf }
  0xfa   : > { %665 = vmax.xlane.f32.xlu1 %v664_v46 }
  0xfe   : > { %668 = vmax.xlane.f32.xlu1 %v667_v47 }
 0x17f   : > { %v660_v48 = vpop.xlane.xlu0 %659 }
 0x180   : > { %v670_v49 = vsub.f32 %v654_v26, %v660_v48 }
 0x182   : > { %v674_v50 = vmul.f32 1.442695, %v670_v49 }
 0x183   : > { %v663_v51 = vpop.xlane.xlu0 %662 }
 0x184   : > { %1279 = vpow2.f32 %v674_v50  ;;  %v671_v52 = vsub.f32 %v655_v28, %v663_v51  ;;  %v979_v51 = vld [vmem:[%s436_s19] sm:$0xf] }
 0x186   : > { %v676_v53 = vmul.f32 1.442695, %v671_v52  ;;  %v1161_v52 = vld [vmem:[%s1513_s6] ss:$0 sm:$0xff] }
 0x187   : > { %v666_v54 = vpop.xlane.xlu1 %665 }
 0x188   : > { %1281 = vpow2.f32 %v676_v53  ;;  %v672_v55 = vsub.f32 %v656_v40, %v666_v54  ;;  %v980_v53 = vunpack.c.l.bf16 %v979_v51 }
 0x18a   : > { %v678_v56 = vmul.f32 1.442695, %v672_v55 }
 0x18b   : > { %v669_v57 = vpop.xlane.xlu1 %668 }
 0x18c   : > { %1283 = vpow2.f32 %v678_v56  ;;  %v673_v58 = vsub.f32 %v657_v42, %v669_v57 }
 0x18e   : > { %v1280_v59 = vpop.eup %1279  ;;  %v680_v60 = vmul.f32 1.442695, %v673_v58 }
 0x18f   : > { %v682_v61 = vsel %vm459_vm1, %v1280_v59, 0.0 }
 0x190   : > { %1285 = vpow2.f32 %v680_v60  ;;  %683 = vadd.xlane.f32.xlu0 %v682_v61 }
 0x192   : > { %v1282_v62 = vpop.eup %1281 }
 0x193   : > { %v685_v63 = vsel %vm459_vm1, %v1282_v62, 0.0 }
 0x194   : > { %686 = vadd.xlane.f32.xlu1 %v685_v63 }
 0x196   : > { %v1284_v1 = vpop.eup %1283 }
 0x197   : > { %v688_v2 = vsel %vm459_vm1, %v1284_v1, 0.0 }
 0x198   : > { %689 = vadd.xlane.f32.xlu0 %v688_v2 }
 0x19a   : > { %v1286_v3 = vpop.eup %1285 }
 0x19b   : > { %v691_v4 = vsel %vm459_vm1, %v1286_v3, 0.0 }
 0x19c   : > { %692 = vadd.xlane.f32.xlu1 %v691_v4 }
 0x21d   : > { %v684_v13 = vpop.xlane.xlu0 %683 }
 0x21e   : > { %1287 = vrcp.f32 %v684_v13 }
 0x221   : > { %v687_v14 = vpop.xlane.xlu1 %686 }
 0x222   : > { %1289 = vrcp.f32 %v687_v14 }
 0x225   : > { %v690_v15 = vpop.xlane.xlu0 %689 }
 0x226   : > { %1291 = vrcp.f32 %v690_v15 }
 0x228   : > { %v1288_v16 = vpop.eup %1287 }
 0x229   : > { %v698_v17 = vmul.f32 %v1288_v16, %v1280_v59  ;;  %v693_v18 = vpop.xlane.xlu1 %692 }
 0x22a   : > { %1293 = vrcp.f32 %v693_v18 }
 0x22b   : > { %v702_v19 = vpack.c.bf16 %v698_v17, %v698_v17 }
 0x22c   : > { %v1290_v20 = vpop.eup %1289 }
 0x22d   : > { %v699_v21 = vmul.f32 %v1290_v20, %v1282_v62  ;;  %1218 = vmatmul.mubr.msk.bf16.vlgmr.msra.gmra.mrb[8].mxu0 %vm459_vm1, %v702_v19 }
 0x22e   : > { %1228 = vmatpush3.bf16.msra.mxu0 %v803_v10  ;;  %1229 = vmatprep.mubr.msk.bf16.mxu0 %vm1322_vm0, %v1321_v0 }
 0x22f   : > { %v703_v22 = vpack.c.bf16 %v699_v21, %v699_v21  ;;  %1239 = vmatprep.subr.bf16.mxu0 %v1321_v0 }
 0x230   : > { %v1292_v23 = vpop.eup %1291 }
 0x231   : > { %v700_v24 = vmul.f32 %v1292_v23, %v1284_v1  ;;  %1224 = vmatmul.mubr.msk.bf16.vlgmr.msra.gmra.mrb[8].mxu1 %vm459_vm1, %v703_v22 }
 0x232   : > { %1234 = vmatpush3.bf16.msra.mxu1 %v849_v12  ;;  %1235 = vmatprep.mubr.msk.bf16.mxu1 %vm1322_vm0, %v1321_v0 }
 0x233   : > { %v704_v25 = vpack.c.bf16 %v700_v24, %v700_v24 }
 0x234   : > { %v1294_v26 = vpop.eup %1293 }
 0x235   : > { %v701_v27 = vmul.f32 %v1294_v26, %v1286_v3  ;;  %1230 = vmatmul.mubr.msk.bf16.vlgmr.msra.gmra.mrb[12].mxu0 %vm459_vm1, %v704_v25 }
 0x236   : > { %1243 = vmatprep.mubr.msk.bf16.mxu0 %vm1322_vm0, %v1321_v0  ;;  %1240 = vmatpush3.bf16.msra.mxu0 %v1277_v30 }
 0x237   : > { %v705_v28 = vpack.c.bf16 %v701_v27, %v701_v27  ;;  %1241 = vmatprep.subr.bf16.mxu0 %v1321_v0 }
 0x239   : > { %1236 = vmatmul.mubr.msk.bf16.vlgmr.msra.gmra.mrb[12].mxu1 %vm459_vm1, %v705_v28 }
 0x23a   : > { %1242 = vmatpush3.bf16.msra.mxu0 %v1278_v33 }
 0x300   : > { %v747_v29 = vpop.f32.mrb[8].mxu0 }
 0x301   : > { %891 = vst.msk [vmem:[#allocation2] sm:$0xff] %vm459_vm1, %v747_v29  ;;  %v1219_v31 = vpop.f32.mrb[9].mxu0 }
 0x302   : > { %v750_v32 = vpop.f32.mrb[10].mxu0 }
 0x303   : > { %v1220_v34 = vpop.f32.mrb[11].mxu0 }
 0x304   : > { %v793_v35 = vpop.f32.mrb[8].mxu1 }
 0x305   : > { %893 = vrot.lane.b32.xlu0 %v793_v35, %s1324_s13  ;;  %v1225_v36 = vpop.f32.mrb[9].mxu1 }
 0x306   : > { %v796_v37 = vpop.f32.mrb[10].mxu1 }
 0x307   : > { %v1226_v38 = vpop.f32.mrb[11].mxu1 }
 0x308   : > { %v839_v39 = vpop.f32.mrb[12].mxu0 }
 0x309   : > { %899 = vrot.lane.b32.xlu1 %v839_v39, %s1325_s14  ;;  %v1231_v40 = vpop.f32.mrb[13].mxu0 }
 0x30a   : > { %v842_v41 = vpop.f32.mrb[14].mxu0 }
 0x30b   : > { %v1232_v42 = vpop.f32.mrb[15].mxu0 }
 0x30c   : > { %v885_v43 = vpop.f32.mrb[12].mxu1 }
 0x30d   : > { %v1237_v44 = vpop.f32.mrb[13].mxu1  ;;  %905 = vrot.lane.b32.xlu1 %v885_v43, %s1326_s15 }
 0x30e   : > { %v888_v45 = vpop.f32.mrb[14].mxu1 }
 0x30f   : > { %v1238_v0 = vpop.f32.mrb[15].mxu1 }
 0x377   : > { %v894_v46 = vpop.permute.xlu0 %893 }
 0x378   : > { %897 = vst.msk [vmem:[#allocation2] sm:$0xff] %vm896_vm5, %v894_v46 }
 0x37b   : > { %v900_v47 = vpop.permute.xlu1 %899 }
 0x37c   : > { %903 = vst.msk [vmem:[#allocation2] sm:$0xff] %vm902_vm6, %v900_v47 }
 0x37f   : > { %v906_v48 = vpop.permute.xlu1 %905 }
 0x380   : > { %909 = vst.msk [vmem:[#allocation2] sm:$0xff] %vm908_vm7, %v906_v48 }
 0x387   : > { %v910_v49 = vld [vmem:[#allocation2] sm:$0xff] }
 0x388   : > { %v911_v50 = vpack.c.bf16 %v910_v49, %v910_v49 }
 0x38a   : > { %1244 = vmatmul.mubr.msk.bf16.vlgmr.msra.gmra.mrb[16].mxu0 %vm935_vm8, %v911_v50 }
 0x45d   : > { %v973_v54 = vpop.f32.mrb[16].mxu0 }
 0x45e   : > { %v974_v55 = vadd.f32 %v1161_v52, %v973_v54  ;;  %v1245_v56 = vpop.f32.mrb[17].mxu0 }
 0x45f   : > { %v976_v57 = vpop.f32.mrb[18].mxu0 }
 0x460   : > { %v1246_v58 = vpop.f32.mrb[19].mxu0  ;;  %v981_v59 = vadd.f32 %v980_v53, %v974_v55 }
 0x462   : > { %v982_v60 = vsel %vm935_vm8, %v981_v59, 0.0 }
 0x463   : > { %983 = vadd.xlane.f32.xlu1 %v982_v60 }
 0x4f0   : > { %v984_v61 = vpop.xlane.xlu1 %983 }
 0x4f1   : > { %v986_v62 = vmul.f32 0.03125, %v984_v61 }
 0x4f3   : > { %v987_v63 = vsub.f32 %v981_v59, %v986_v62 }
 0x4f5   : > { %v988_v1 = vmul.f32 %v987_v63, %v987_v63 }
 0x4f7   : > { %v989_v2 = vsel %vm935_vm8, %v988_v1, 0.0 }
 0x4f8   : > { %990 = vadd.xlane.f32.xlu0 %v989_v2 }
 0x585   : > { %v991_v3 = vpop.xlane.xlu0 %990 }
 0x586   : > { %v992_v4 = vmul.f32 0.03125, %v991_v3 }
 0x588   : > { %v993_v5 = vadd.f32 1e-05, %v992_v4 }
 0x58a   : > { %1295 = vrsqrt.f32 %v993_v5 }
 0x594   : > { %v1296_v6 = vpop.eup %1295 }
 0x595   : > { %v995_v8 = vmul.f32 %v1296_v6, %v987_v63 }
 0x597   : > { %v1003_v10 = vmul.f32 %v1165_v7, %v995_v8 }
 0x599   : > { %v1011_v11 = vadd.f32 %v1166_v9, %v1003_v10 }
 0x59b   : > { %v1012_v12 = vpack.c.bf16 %v1011_v11, %v1011_v11 }
 0x59d   : > { %1014 = vst.msk [vmem:[%s443_s28] sm:$0xf] %vm1013_vm9, %v1012_v12 }
 0x59e PF: > { %s19_s11 = sadd.s32 1, %s1319_s11   ;;  %s1517_s30 = smov %s1315_s10 }
 0x59f   : > { %p16_p5 = scmp.ge.s32.totalorder %s19_s11, 4   ;;  %s1518_s10 = smov %s1520_s12 }
 0x5a1   :  { %18 = sbr.rel (!%p16_p5) target bundleno = 2 (0x2), region = 98 }

// kernel: transformer_fwd.21
= control target key start
LH: loop header
LB: loop body
LE: loop exit
PB: predicated region body
PF: predicated region fallthrough
CT: control target
= control target key end

     0   :  { %vm31_vm0 = vcmask 261120   ;;  %v332_v0 = vmov 0.0   ;;  %vm333_vm1 = vmmov 0   ;;  %vm146_vm2 = vcmask 523264   ;;  %s422_s1 = inlined_call_operand.vmem [shape: bf16[32,64], index: 1, kind: input, shape index: {}]   ;;  %s423_s0 = inlined_call_operand.vmem [shape: bf16[16,32], index: 0, kind: input, shape index: {}]   ;;  %s424_s3 = inlined_call_operand.vmem [shape: bf16[64,32], index: 3, kind: input, shape index: {}]   ;;  %s425_s2 = inlined_call_operand.vmem [shape: f32[1,64], index: 2, kind: input, shape index: {}]   ;;  %s426_s4 = inlined_call_operand.vmem [shape: f32[1,32], index: 4, kind: input, shape index: {}]   ;;  %s427_s5 = inlined_call_operand.vmem [shape: f32[1,32], index: 5, kind: input, shape index: {}]   ;;  %s428_s6 = inlined_call_operand.vmem [shape: f32[1,32], index: 6, kind: input, shape index: {}]   ;;  %s429_s7 = inlined_call_operand.vmem [shape: bf16[16,32], index: 7, kind: output, shape index: {}]  }
   0x1   :  { %298 = vmatprep.subr.bf16.mxu0 %v332_v0  ;;  %v320_v1 = vld [vmem:[%s422_s1] sm:$0xff]   ;;  %302 = vmatprep.mubr.msk.bf16.mxu0 %vm333_vm1, %v332_v0  ;;  %32 = vst.msk [vmem:[#allocation2] sm:$0xff] %vm31_vm0, %v332_v0  ;;  %33 = vst.msk [vmem:[#allocation2 + $0x8] sm:$0xff] %vm31_vm0, %v332_v0  ;;  %v321_v2 = vld [vmem:[%s422_s1 + $0x8] sm:$0xff]   ;;  %vm266_vm3 = vcmask 257024  }
   0x2   :  { %306 = vmatprep.subr.bf16.mxu1 %v332_v0  ;;  %314 = vmatprep.mubr.msk.bf16.mxu1 %vm333_vm1, %v332_v0  ;;  %v34_v3 = vld [vmem:[%s423_s0] sm:$0xff]   ;;  %v324_v5 = vld [vmem:[%s424_s3 + $0x8] sm:$0xff]   ;;  %v325_v6 = vld [vmem:[%s424_s3 + $0x10] sm:$0xff]  }
   0x3   :  { %299 = vmatpush3.bf16.msra.mxu0 %v320_v1  ;;  %v323_v4 = vld [vmem:[%s424_s3] sm:$0xff]   ;;  %v326_v7 = vld [vmem:[%s424_s3 + $0x18] sm:$0xff]   ;;  %v209_v27 = vunpack.c.l.bf16 %v34_v3  ;;  %v210_v30 = vunpack.c.h.bf16 %v34_v3 }
   0x4   :  { %300 = vmatprep.subr.bf16.mxu0 %v332_v0  ;;  %307 = vmatpush3.bf16.msra.mxu1 %v323_v4  ;;  %v273_v8 = vld [vmem:[%s425_s2] ss:$0 sm:$0xff] }
   0x5   :  { %308 = vmatprep.subr.bf16.mxu1 %v332_v0  ;;  %v283_v26 = vld [vmem:[%s426_s4] ss:$0 sm:$0xff] }
   0x6   :  { %v284_v54 = vld [vmem:[%s427_s5] ss:$0 sm:$0xff] }
   0x7   :  { %301 = vmatpush3.bf16.msra.mxu0 %v321_v2  ;;  %v285_v56 = vld [vmem:[%s428_s6] ss:$0 sm:$0xff] }
   0x8   :  { %309 = vmatpush3.bf16.msra.mxu1 %v324_v5  ;;  %v111_v18 = vld [vmem:[#allocation2] sm:$0xff]  ;;  %v112_v20 = vld [vmem:[#allocation2 + $0x8] sm:$0xff] }
   0x9   :  { %310 = vmatprep.subr.bf16.mxu1 %v332_v0 }
   0xa   :  { %303 = vmatmul.mubr.msk.bf16.vlgmr.msra.gmra.mrb[0].mxu0 %vm31_vm0, %v34_v3 }
   0xc   :  { %311 = vmatpush3.bf16.msra.mxu1 %v325_v6 }
   0xd   :  { %312 = vmatprep.subr.bf16.mxu1 %v332_v0 }
  0x10   :  { %313 = vmatpush3.bf16.msra.mxu1 %v326_v7 }
  0xdd   :  { %v102_v9 = vpop.f32.mrb[0].mxu0 }
  0xde   :  { %v103_v10 = vadd.f32 %v273_v8, %v102_v9  ;;  %v304_v11 = vpop.f32.mrb[1].mxu0 }
  0xdf   :  { %v105_v12 = vpop.f32.mrb[2].mxu0 }
  0xe0   :  { %v106_v13 = vadd.f32 %v273_v8, %v105_v12  ;;  %v305_v14 = vpop.f32.mrb[3].mxu0  ;;  %v109_v15 = vmax.f32 %v103_v10, 0.0 }
  0xe2   :  { %v110_v16 = vmax.f32 %v106_v13, 0.0 }
  0xe4   :  { %v113_v17 = vpack.c.bf16 %v110_v16, %v109_v15 }
  0xe6   :  { %315 = vmatmul.mubr.msk.bf16.vlgmr.msra.gmra.mrb[0].mxu1 %vm146_vm2, %v113_v17 }
 0x1b9   :  { %v184_v19 = vpop.f32.mrb[0].mxu1 }
 0x1ba   :  { %v191_v21 = vadd.f32 %v184_v19, %v111_v18  ;;  %v316_v22 = vpop.f32.mrb[1].mxu1 }
 0x1bb   :  { %v187_v23 = vpop.f32.mrb[2].mxu1 }
 0x1bc   :  { %193 = vst.msk [vmem:[#allocation2] sm:$0xff] %vm31_vm0, %v191_v21  ;;  %v192_v24 = vadd.f32 %v187_v23, %v112_v20  ;;  %v317_v25 = vpop.f32.mrb[3].mxu1 }
 0x1be   :  { %194 = vst.msk [vmem:[#allocation2 + $0x8] sm:$0xff] %vm31_vm0, %v192_v24 }
 0x1c3   :  { %v198_v28 = vld [vmem:[#allocation2] sm:$0xff] }
 0x1c4   :  { %v207_v29 = vadd.f32 %v283_v26, %v198_v28 }
 0x1c5   :  { %v199_v31 = vld [vmem:[#allocation2 + $0x8] sm:$0xff] }
 0x1c6   :  { %v211_v32 = vadd.f32 %v209_v27, %v207_v29  ;;  %v208_v33 = vadd.f32 %v283_v26, %v199_v31 }
 0x1c8   :  { %v213_v34 = vsel %vm31_vm0, %v211_v32, 0.0  ;;  %v212_v35 = vadd.f32 %v210_v30, %v208_v33 }
 0x1c9   :  { %214 = vadd.xlane.f32.xlu0 %v213_v34 }
 0x1ca   :  { %v216_v36 = vsel %vm31_vm0, %v212_v35, 0.0 }
 0x1cd   :  { %217 = vadd.xlane.f32.xlu0 %v216_v36 }
 0x256   :  { %v215_v37 = vpop.xlane.xlu0 %214 }
 0x257   :  { %v220_v38 = vmul.f32 0.03125, %v215_v37 }
 0x259   :  { %v222_v39 = vsub.f32 %v211_v32, %v220_v38 }
 0x25a   :  { %v218_v40 = vpop.xlane.xlu0 %217 }
 0x25b   :  { %v221_v41 = vmul.f32 0.03125, %v218_v40  ;;  %v224_v42 = vmul.f32 %v222_v39, %v222_v39 }
 0x25d   :  { %v223_v43 = vsub.f32 %v212_v35, %v221_v41  ;;  %v226_v44 = vsel %vm31_vm0, %v224_v42, 0.0 }
 0x25e   :  { %227 = vadd.xlane.f32.xlu1 %v226_v44 }
 0x25f   :  { %v225_v45 = vmul.f32 %v223_v43, %v223_v43 }
 0x261   :  { %v229_v46 = vsel %vm31_vm0, %v225_v45, 0.0 }
 0x262   :  { %230 = vadd.xlane.f32.xlu1 %v229_v46 }
 0x2eb   :  { %v228_v47 = vpop.xlane.xlu1 %227 }
 0x2ec   :  { %v232_v48 = vmul.f32 0.03125, %v228_v47 }
 0x2ee   :  { %v234_v49 = vadd.f32 1e-05, %v232_v48 }
 0x2ef   :  { %v231_v50 = vpop.xlane.xlu1 %230 }
 0x2f0   :  { %328 = vrsqrt.f32 %v234_v49  ;;  %v233_v51 = vmul.f32 0.03125, %v231_v50 }
 0x2f2   :  { %v235_v52 = vadd.f32 1e-05, %v233_v51 }
 0x2f4   :  { %330 = vrsqrt.f32 %v235_v52 }
 0x2fa   :  { %v329_v53 = vpop.eup %328 }
 0x2fb   :  { %v238_v55 = vmul.f32 %v329_v53, %v222_v39 }
 0x2fd   :  { %v247_v57 = vmul.f32 %v284_v54, %v238_v55 }
 0x2fe   :  { %v331_v58 = vpop.eup %330 }
 0x2ff   :  { %v256_v59 = vadd.f32 %v285_v56, %v247_v57  ;;  %v239_v60 = vmul.f32 %v331_v58, %v223_v43 }
 0x301   :  { %v288_v61 = vpack.c.bf16 %v256_v59, %v256_v59  ;;  %v248_v62 = vmul.f32 %v284_v54, %v239_v60 }
 0x303   :  { %267 = vst.msk [vmem:[%s429_s7] sm:$0xf] %vm266_vm3, %v288_v61  ;;  %v257_v63 = vadd.f32 %v285_v56, %v248_v62 }
 0x305   :  { %v289_v0 = vpack.c.bf16 %v257_v63, %v257_v63 }
 0x307   :  { %268 = vst.msk [vmem:[%s429_s7 + $0x4] sm:$0xf] %vm266_vm3, %v289_v0 }

// kernel: transformer_fwd.27
= control target key start
LH: loop header
LB: loop body
LE: loop exit
PB: predicated region body
PF: predicated region fallthrough
CT: control target
= control target key end

     0   :  { %vm19_vm0 = vcmask 523264   ;;  %v151_v0 = vmov 0.0   ;;  %vm152_vm1 = vmmov 0   ;;  %vm47_vm2 = vcmask 261120   ;;  %s195_s1 = inlined_call_operand.vmem [shape: bf16[32,64], index: 1, kind: input, shape index: {}]   ;;  %s196_s0 = inlined_call_operand.vmem [shape: bf16[16,32], index: 0, kind: input, shape index: {}]   ;;  %s197_s2 = inlined_call_operand.vmem [shape: f32[1,64], index: 2, kind: input, shape index: {}]   ;;  %s198_s3 = inlined_call_operand.vmem [shape: bf16[16,64], index: 3, kind: output, shape index: {}]  }
   0x1   :  { %138 = vmatprep.subr.bf16.mxu0 %v151_v0  ;;  %v148_v1 = vld [vmem:[%s195_s1] sm:$0xff]   ;;  %142 = vmatprep.mubr.msk.bf16.mxu0 %vm152_vm1, %v151_v0  ;;  %20 = vst.msk [vmem:[#allocation2] sm:$0xff] %vm19_vm0, %v151_v0  ;;  %21 = vst.msk [vmem:[#allocation2 + $0x8] sm:$0xff] %vm19_vm0, %v151_v0  ;;  %v149_v2 = vld [vmem:[%s195_s1 + $0x8] sm:$0xff]   ;;  %vm119_vm3 = vcmask 519168  }
   0x2   :  { %139 = vmatpush3.bf16.msra.mxu0 %v148_v1  ;;  %v150_v3 = vld [vmem:[%s196_s0] sm:$0xff]  }
   0x3   :  { %140 = vmatprep.subr.bf16.mxu0 %v151_v0  ;;  %v130_v12 = vld [vmem:[%s197_s2] ss:$0 sm:$0xff] }
   0x6   :  { %141 = vmatpush3.bf16.msra.mxu0 %v149_v2 }
   0x8   :  { %v22_v4 = vld [vmem:[#allocation2] sm:$0xff]  ;;  %v23_v6 = vld [vmem:[#allocation2 + $0x8] sm:$0xff] }
   0x9   :  { %143 = vmatmul.mubr.msk.bf16.vlgmr.msra.gmra.mrb[0].mxu0 %vm47_vm2, %v150_v3 }
  0xdc   :  { %v85_v5 = vpop.f32.mrb[0].mxu0 }
  0xdd   :  { %v92_v7 = vadd.f32 %v85_v5, %v22_v4  ;;  %v144_v8 = vpop.f32.mrb[1].mxu0 }
  0xde   :  { %v88_v9 = vpop.f32.mrb[2].mxu0 }
  0xdf   :  { %95 = vst.msk [vmem:[#allocation2] sm:$0xff] %vm19_vm0, %v92_v7  ;;  %v93_v10 = vadd.f32 %v88_v9, %v23_v6  ;;  %v145_v11 = vpop.f32.mrb[3].mxu0 }
  0xe1   :  { %96 = vst.msk [vmem:[#allocation2 + $0x8] sm:$0xff] %vm19_vm0, %v93_v10 }
  0xe6   :  { %v100_v13 = vld [vmem:[#allocation2] sm:$0xff] }
  0xe7   :  { %v109_v14 = vadd.f32 %v130_v12, %v100_v13 }
  0xe8   :  { %v101_v15 = vld [vmem:[#allocation2 + $0x8] sm:$0xff] }
  0xe9   :  { %v133_v16 = vpack.c.bf16 %v109_v14, %v109_v14  ;;  %v110_v17 = vadd.f32 %v130_v12, %v101_v15 }
  0xeb   :  { %120 = vst.msk [vmem:[%s198_s3] sm:$0xf] %vm119_vm3, %v133_v16  ;;  %v134_v18 = vpack.c.bf16 %v110_v17, %v110_v17 }
  0xed   :  { %121 = vst.msk [vmem:[%s198_s3 + $0x4] sm:$0xf] %vm119_vm3, %v134_v18 }

// kernel: transformer_fwd.37
= control target key start
LH: loop header
LB: loop body
LE: loop exit
PB: predicated region body
PF: predicated region fallthrough
CT: control target
= control target key end

     0   :  { %v178_v1 = vmov 0.0   ;;  %vm179_vm0 = vmmov 0   ;;  %vm20_vm1 = vcmask 105472   ;;  %s233_s0 = inlined_call_operand.vmem [shape: bf16[16,32], index: 0, kind: input, shape index: {}]   ;;  %s234_s1 = inlined_call_operand.vmem [shape: bf16[32,13], index: 1, kind: input, shape index: {}]   ;;  %s235_s2 = inlined_call_operand.vmem [shape: f32[1,13], index: 2, kind: input, shape index: {}]   ;;  %s236_s3 = inlined_call_operand.hbm [shape: f32[16,13], index: 3, kind: output, shape index: {}]  }
   0x1   :  { %v151_v0 = vld [vmem:[%s234_s1] sm:$0xff]   ;;  %138 = vmatprep.subr.bf16.mxu0 %v178_v1  ;;  %v152_v2 = vld [vmem:[%s234_s1 + $0x8] sm:$0xff]   ;;  %142 = vmatprep.mubr.msk.bf16.mxu0 %vm179_vm0, %v178_v1 }
   0x2   :  { %139 = vmatpush3.bf16.msra.mxu0 %v151_v0 }
   0x3   :  { %140 = vmatprep.subr.bf16.mxu0 %v178_v1 }
   0x4   :  { %8 = vsyncpa [#allocation4], 0  ;;  %21 = vst.msk [vmem:[#allocation2] sm:$0xff] %vm20_vm1, %v178_v1  ;;  %v153_v3 = vld [vmem:[%s233_s0] sm:$0xff]   ;;  %vm48_vm2 = vcmask 261120   ;;  %s180_s0 = smov [#allocation3]  }
   0x5   :  { %22 = vst.msk [vmem:[#allocation2 + $0x8] sm:$0xff] %vm20_vm1, %v178_v1  ;;  %v134_v12 = vld [vmem:[%s235_s2] ss:$0 sm:$0xff]  ;;  %s119_s19 = sshll.u32 %s180_s0, 4  ;;  %s120_s19 = int_to_ptr.vmem [resolvable:$true] %s119_s19 }
   0x6   :  { %141 = vmatpush3.bf16.msra.mxu0 %v152_v2  ;;  %s154_s20 = scalar_lea.vmem %s120_s19, 256  ;;  %p159_p1 = scmp.lt.s32.totalorder %s120_s19, %s120_s19 }
   0x7   :  { %p155_p0 = scmp.ne.s32.totalorder %s120_s19, %s154_s20  ;;  %p160_p2 = scmp.lt.s32.totalorder %s154_s20, %s154_s20 }
   0x9   :  { %143 = vmatmul.mubr.msk.bf16.vlgmr.msra.gmra.mrb[0].mxu0 %vm48_vm2, %v153_v3  ;;  %p161_p3 = por %p160_p2, %p159_p1 }
   0xb   :  { %v23_v4 = vld [vmem:[#allocation2] sm:$0xff]  ;;  %p162_p4 = pnand %p161_p3, %p155_p0 }
   0xc   :  { %v24_v6 = vld [vmem:[#allocation2 + $0x8] sm:$0xff] }
  0xdc   :  { %v86_v5 = vpop.f32.mrb[0].mxu0 }
  0xdd   :  { %v93_v7 = vadd.f32 %v86_v5, %v23_v4  ;;  %v144_v8 = vpop.f32.mrb[1].mxu0 }
  0xde   :  { %v89_v9 = vpop.f32.mrb[2].mxu0 }
  0xdf   :  { %96 = vst.msk [vmem:[#allocation2] sm:$0xff] %vm20_vm1, %v93_v7  ;;  %v94_v10 = vadd.f32 %v89_v9, %v24_v6  ;;  %v145_v11 = vpop.f32.mrb[3].mxu0 }
  0xe1   :  { %97 = vst.msk [vmem:[#allocation2 + $0x8] sm:$0xff] %vm20_vm1, %v94_v10 }
  0xe6   :  { %v101_v13 = vld [vmem:[#allocation2] sm:$0xff] }
  0xe7   :  { %v110_v14 = vadd.f32 %v134_v12, %v101_v13 }
  0xe8   :  { %v102_v15 = vld [vmem:[#allocation2 + $0x8] sm:$0xff] }
  0xe9   :  { %v111_v16 = vadd.f32 %v134_v12, %v102_v15  ;;  %112 = vst.msk [vmem:[#allocation3] sm:$0xff] %vm20_vm1, %v110_v14 }
  0xeb   :  { %113 = vst.msk [vmem:[#allocation3 + $0x8] sm:$0xff] %vm20_vm1, %v111_v16 }
  0xec   :  { %165 = shalt.err (!%p162_p4)
}
  0xed   :  { %s166_s22 = scalar_lea.hbm %s236_s3, 256 }
  0xee   :  { %p167_p5 = scmp.ne.s32.totalorder %s236_s3, %s166_s22  ;;  %p170_p6 = scmp.lt.u32.totalorder %s166_s22, %s236_s3 }
  0xf0   :  { %p172_p7 = pnand %p170_p6, %p167_p5 }
  0xf2   :  { %175 = shalt.err (!%p172_p7)
}
  0xf3   :  { %s181_s27 = smov 128   ;;  %s182_s28 = smov 8  }
  0xf4   :  { %125 = dma.vmem_to_hbm [thread:$0]  %s120_s19, 256, %s236_s3, [#allocation4], %s181_s27, %s181_s27, %s182_s28  }
  0xf5   :  { %176 = dma.done.wait [#allocation4], 256  }
  0xf6   :  { %177 = vsyncadd [#allocation4], 4294967040 }
  0xf7   :  { %129 = vsyncpa [#allocation4], 1 }

</bundles_post_ra>
